<compile_context>
chip_gen: v7x
topology: tpu7x:2x2x1
jax: 0.10.0
libtpu: 0.0.40
codegen_flags: <defaults>
</compile_context>

<pallas_src>
import functools

import jax
import jax.numpy as jnp
import numpy as np
from jax.experimental import pallas as pl
from jax.experimental.pallas import tpu as pltpu


# ----------------------------- Pallas kernel --------------------------------
def _make_bigru_kernel(TC, B, H, unroll):
    """Fused bidirectional GRU recurrence + fused final Linear, per time chunk.

    gi_ref  : (TC*B, 6H) f32   precomputed input projections (time-major rows,
                               B rows per timestep), columns [r_f r_b|z_f z_b|n_f n_b],
                               with b_ih (all gates) and b_hh (r,z) folded in.
                               Row-block j holds x[t] (fwd) and x[T-1-t] (bwd) terms.
    whh_ref : (2H, 6H) bf16    block-diagonal fused hidden->gate weights (resident).
    bhn_ref : (1, 2H)  f32     n-gate hidden biases [b_hn_f | b_hn_b].
    wlf_ref : (H, 128) f32     final-Linear forward-half weight, col 0 real, rest 0.
    wlb_ref : (H, 128) f32     final-Linear backward-half weight, col 0 real, rest 0.
    lf_ref  : (TC*B, 128) f32  forward logit contribution for this chunk.
    lb_ref  : (TC*B, 128) f32  backward logit contribution, written (via its
                               BlockSpec) to the time-mirrored chunk.
    h_carry : (B, 2H)  f32     hidden state carried across chunks.
    hsf/hsb : (TC*B, H) f32    per-chunk hidden scratch (fwd / time-aligned bwd).
    """
    H2, H4, H6 = 2 * H, 4 * H, 6 * H

    def kernel(gi_ref, whh_ref, bhn_ref, wlf_ref, wlb_ref,
               lf_ref, lb_ref, h_carry, hsf, hsb):
        c = pl.program_id(0)

        @pl.when(c == 0)                       # start of the sequence
        def _():
            h_carry[...] = jnp.zeros_like(h_carry)

        whh = whh_ref[...]                                   # (2H,6H) bf16, loop-resident
        # Hoisted: broadcast once, not T times inside the unrolled loop.
        bhn_b = jnp.broadcast_to(bhn_ref[...], (B, H2))      # (B, 2H)

        def step(j, h):                        # h: (B, 2H) f32 = [h_f | h_b]
            row = pl.multiple_of(j * B, B)
            gi = gi_ref[pl.ds(row, B), :]                     # (B, 6H) f32
            # Single MXU push per timestep (K=2H, N=6H), bf16 operands, f32 acc.
            gh = jnp.dot(h.astype(jnp.bfloat16), whh,
                         preferred_element_type=jnp.float32)  # (B, 6H) f32
            rz = jax.nn.sigmoid(gi[:, :H4] + gh[:, :H4])      # [r_f r_b z_f z_b]
            r = rz[:, :H2]
            z = rz[:, H2:H4]
            n = jnp.tanh(gi[:, H4:H6] + r * (gh[:, H4:H6] + bhn_b))
            h_new = (1.0 - z) * n + z * h
            # forward hidden at local time j; backward hidden time-aligned at TC-1-j
            hsf[pl.ds(row, B), :] = h_new[:, :H]
            row_b = pl.multiple_of((TC - 1 - j) * B, B)
            hsb[pl.ds(row_b, B), :] = h_new[:, H:H2]
            return h_new

        h_final = jax.lax.fori_loop(0, TC, step, h_carry[...], unroll=unroll)
        h_carry[...] = h_final

        # Fused Linear(2H->1): ONE lane-dense MXU dot per direction per chunk.
        HI = jax.lax.Precision.HIGHEST          # off the serial critical path
        lf_ref[...] = jnp.dot(hsf[...], wlf_ref[...], precision=HI,
                              preferred_element_type=jnp.float32)   # (TC*B,128)
        lb_ref[...] = jnp.dot(hsb[...], wlb_ref[...], precision=HI,
                              preferred_element_type=jnp.float32)   # (TC*B,128)

    return kernel


# ----------------------------- param / input packing -------------------------
def init_params(key, H):
    """PyTorch-style uniform(-1/sqrt(H), 1/sqrt(H)) init; stored pre-transposed
    so projections compute x @ W (gate order [r | z | n])."""
    k = 1.0 / np.sqrt(H)
    keys = jax.random.split(key, 10)
    u = lambda kk, shape: jax.random.uniform(kk, shape, jnp.float32, -k, k)
    return {
        "wih_f": u(keys[0], (3, 3 * H)),
        "whh_f": u(keys[1], (H, 3 * H)),
        "bih_f": u(keys[2], (1, 3 * H)),
        "bhh_f": u(keys[3], (1, 3 * H)),
        "wih_b": u(keys[4], (3, 3 * H)),
        "whh_b": u(keys[5], (H, 3 * H)),
        "bih_b": u(keys[6], (1, 3 * H)),
        "bhh_b": u(keys[7], (1, 3 * H)),
        "wlin":  u(keys[8], (1, 2 * H)),
        "blin":  u(keys[9], (1, 1)),
    }


def pack_params(p, H):
    """One-time re-layout into the fused kernel layouts (kept OFF the per-call path)."""
    f32 = jnp.float32

    def fuse_cols(mf, mb):
        # (..., 3H) each, [r|z|n]  ->  (..., 6H) [r_f r_b | z_f z_b | n_f n_b]
        return jnp.concatenate([mf[..., 0:H], mb[..., 0:H],
                                mf[..., H:2 * H], mb[..., H:2 * H],
                                mf[..., 2 * H:3 * H], mb[..., 2 * H:3 * H]], axis=-1)

    # input weights: rows 0:3 consume x[t] (fwd), rows 3:6 consume x[T-1-t] (bwd)
    Z3 = jnp.zeros((3, 3 * H), f32)
    wih_big = jnp.concatenate(
        [fuse_cols(p["wih_f"], Z3), fuse_cols(Z3, p["wih_b"])], axis=0)     # (6, 6H)

    # biases folded into gi: b_ih (all gates) + b_hh (r,z only); n-gate b_hh kept apart
    bih = fuse_cols(p["bih_f"], p["bih_b"])                                  # (1, 6H)
    bhh_rz = fuse_cols(p["bhh_f"], p["bhh_b"]).at[:, 4 * H:].set(0.0)
    bias_big = bih + bhh_rz                                                  # (1, 6H)
    bhn = jnp.concatenate([p["bhh_f"][:, 2 * H:], p["bhh_b"][:, 2 * H:]], axis=1)  # (1, 2H)

    # block-diagonal hidden->gate weights, rows = [h_f | h_b]; pre-cast to bf16
    ZH = jnp.zeros((H, 3 * H), f32)
    whh_big = jnp.concatenate(
        [fuse_cols(p["whh_f"], ZH), fuse_cols(ZH, p["whh_b"])], axis=0
    ).astype(jnp.bfloat16)                                                   # (2H, 6H)

    # final Linear(2H->1), zero-padded to 128 output lanes (column 0 = real logit)
    w = p["wlin"][0]
    wlin_f = jnp.zeros((H, 128), f32).at[:, 0].set(w[:H])
    wlin_b = jnp.zeros((H, 128), f32).at[:, 0].set(w[H:])

    return {"wih_big": wih_big, "bias_big": bias_big, "bhn": bhn,
            "whh_big": whh_big, "wlin_f": wlin_f, "wlin_b": wlin_b,
            "blin": p["blin"]}


def build_x_in(imputed_X, miss_mask, key, hint_rate=0.8):
    """Hint construction (the torch.rand glue) — plain JAX."""
    B, T, _ = imputed_X.shape
    hint = (jax.random.uniform(key, (B, T, 1)) < hint_rate).astype(jnp.float32)
    h = hint * miss_mask[:, :, 0:1] + (1.0 - hint) * 0.5
    return jnp.concatenate([imputed_X, h], axis=-1).astype(jnp.float32)      # (B,T,3)


def pack_inputs(x_in, B_pad):
    """(B,T,3) -> time-major, batch-padded, [x[t] | x[T-1-t]] features (T,B_pad,6).
    Done here once so pad/transpose/reverse stay out of the discriminator trace."""
    B, T, _ = x_in.shape
    x = jnp.pad(x_in, ((0, B_pad - B), (0, 0), (0, 0)))
    xt = jnp.transpose(x, (1, 0, 2))                       # (T, B_pad, 3)
    return jnp.concatenate([xt, xt[::-1]], axis=-1)        # (T, B_pad, 6)


# ----------------------------- wrapper ---------------------------------------
@functools.partial(jax.jit, static_argnames=("B", "H", "chunk"))
def discriminator_pallas(xx, packed, *, B, H, chunk=None):
    """xx: (T, B_pad, 6) from pack_inputs; packed: pack_params output."""
    T, B_pad, F2 = xx.shape
    assert F2 == 6 and B_pad % 8 == 0
    H2, H6 = 2 * H, 6 * H
    TC = chunk if chunk is not None else min(T, 128)       # timesteps per grid step
    assert T % TC == 0
    n_chunks = T // TC

    HI = jax.lax.Precision.HIGHEST
    # Hoisted input projections: one batched matmul for both directions / all gates.
    gi = (jnp.einsum("tbf,fk->tbk", xx, packed["wih_big"], precision=HI)
          + packed["bias_big"][0]).reshape(T * B_pad, H6)              # (T*B_pad, 6H)

    kernel = _make_bigru_kernel(TC, B_pad, H, unroll=min(TC, 8))

    # Explicit VMEM budget: double-buffered gi + 2x2 logit blocks + weights + scratch.
    gi_blk = TC * B_pad * H6 * 4
    out_blk = TC * B_pad * 128 * 4
    w_bytes = H2 * H6 * 2 + H2 * 4 + 2 * H * 128 * 4
    scr = B_pad * H2 * 4 + 2 * TC * B_pad * H * 4
    need = 2 * gi_blk + 4 * out_blk + 2 * w_bytes + scr
    vmem_limit = int(min(max(2 * need, 16 * 2**20), 48 * 2**20))

    cost = pl.CostEstimate(
        flops=int(T * 2 * B_pad * H2 * H6 + 2 * T * B_pad * 2 * H * 128),
        transcendentals=int(T * B_pad * H6),
        bytes_accessed=int(T * B_pad * H6 * 4 + 2 * T * B_pad * 128 * 4 + w_bytes))

    lf, lb = pl.pallas_call(
        kernel,
        out_shape=(jax.ShapeDtypeStruct((T * B_pad, 128), jnp.float32),
                   jax.ShapeDtypeStruct((T * B_pad, 128), jnp.float32)),
        grid_spec=pltpu.PrefetchScalarGridSpec(
            num_scalar_prefetch=0,
            grid=(n_chunks,),
            in_specs=[
                pl.BlockSpec((TC * B_pad, H6), lambda c: (c, 0)),     # streamed gi chunk
                pl.BlockSpec((H2, H6), lambda c: (0, 0)),             # whh (resident)
                pl.BlockSpec((1, H2), lambda c: (0, 0)),              # bhn
                pl.BlockSpec((H, 128), lambda c: (0, 0)),             # wlin fwd half
                pl.BlockSpec((H, 128), lambda c: (0, 0)),             # wlin bwd half
            ],
            out_specs=[
                pl.BlockSpec((TC * B_pad, 128), lambda c: (c, 0)),                 # fwd logits
                pl.BlockSpec((TC * B_pad, 128), lambda c: (n_chunks - 1 - c, 0)),  # bwd (mirrored)
            ],
            scratch_shapes=[
                pltpu.VMEM((B_pad, H2), jnp.float32),        # carried hidden [h_f|h_b]
                pltpu.VMEM((TC * B_pad, H), jnp.float32),    # forward hidden chunk
                pltpu.VMEM((TC * B_pad, H), jnp.float32),    # backward hidden chunk
            ]),
        compiler_params=pltpu.CompilerParams(
            dimension_semantics=("arbitrary",),              # carried time axis
            vmem_limit_bytes=vmem_limit),
        cost_estimate=cost,
    )(gi, packed["whh_big"], packed["bhn"], packed["wlin_f"], packed["wlin_b"])

    lf = lf.reshape(T, B_pad, 128)
    lb = lb.reshape(T, B_pad, 128)
    logit_tb = lf[:, :B, 0] + lb[:, :B, 0] + packed["blin"][0, 0]      # (T, B)
    return jnp.transpose(logit_tb, (1, 0))[:, :, None]                 # (B, T, 1)


# ----------------------------- pure-JAX reference ----------------------------
def _gru_cell_ref(x, h, wih, whh, bih, bhh, H):
    HI = jax.lax.Precision.HIGHEST
    gi = jnp.dot(x, wih, precision=HI) + bih[0]
    gh = jnp.dot(h, whh, precision=HI) + bhh[0]
    r = jax.nn.sigmoid(gi[:, :H] + gh[:, :H])
    z = jax.nn.sigmoid(gi[:, H:2 * H] + gh[:, H:2 * H])
    n = jnp.tanh(gi[:, 2 * H:] + r * gh[:, 2 * H:])
    return (1.0 - z) * n + z * h


def discriminator_ref(x_in, p, H):
    B, T, _ = x_in.shape
    hf = jnp.zeros((B, H), jnp.float32)
    hb = jnp.zeros((B, H), jnp.float32)
    outs_f = [None] * T
    outs_b = [None] * T
    for t in range(T):
        hf = _gru_cell_ref(x_in[:, t], hf, p["wih_f"], p["whh_f"],
                           p["bih_f"], p["bhh_f"], H)
        outs_f[t] = hf
    for t in range(T - 1, -1, -1):
        hb = _gru_cell_ref(x_in[:, t], hb, p["wih_b"], p["whh_b"],
                           p["bih_b"], p["bhh_b"], H)
        outs_b[t] = hb
    out = jnp.stack(
        [jnp.concatenate([outs_f[t], outs_b[t]], -1) for t in range(T)], axis=1)
    logit = jnp.einsum("bth,h->bt", out, p["wlin"][0],
                       precision=jax.lax.Precision.HIGHEST)[..., None] + p["blin"][0, 0]
    return logit  # (B, T, 1)


# ----------------------------- main -------------------------------------------
if __name__ == "__main__":
    B, T, H = 2, 8, 16          # batch, sequence length (kwkh), rnn_hid_size
    hint_rate = 0.8

    root = jax.random.PRNGKey(0)
    k_x, k_m, k_hint, k_p = jax.random.split(root, 4)

    imputed_X = jax.random.normal(k_x, (B, T, 2), jnp.float32)
    miss_mask = (jax.random.uniform(k_m, (B, T, 2)) > 0.3).astype(jnp.float32)
    params = init_params(k_p, H)
    packed = pack_params(params, H)                     # one-time fused-layout packing

    x_in = build_x_in(imputed_X, miss_mask, k_hint, hint_rate)

    # Batch padded to a sublane multiple of 8; pack more sequences / hint samples
    # (up to ~128 rows) to fill the MXU at essentially the same wall time.
    B_pad = max(8, ((B + 7) // 8) * 8)
    xx = pack_inputs(x_in, B_pad)

    logit = discriminator_pallas(xx, packed, B=B, H=H, chunk=T)
    logit = jax.block_until_ready(logit)

    ref = discriminator_ref(x_in, params, H)
    # Recurrent dot is a single bf16 MXU pass (pre-cast whh); tolerance reflects
    # that vs. the f32-HIGHEST reference.
    np.testing.assert_allclose(np.asarray(logit), np.asarray(ref),
                               atol=1e-2, rtol=1e-2)

    assert logit.shape == (B, T, 1)
    print("KERNEL_OK")
</pallas_src>

<mosaic_0001>
module attributes {stable_mosaic.version = 11 : i64} {
  func.func @kernel(%arg0: i32, %arg1: memref<64x96xf32, #tpu.memory_space<vmem>>, %arg2: memref<32x96xbf16, #tpu.memory_space<vmem>>, %arg3: memref<1x32xf32, #tpu.memory_space<vmem>>, %arg4: memref<16x128xf32, #tpu.memory_space<vmem>>, %arg5: memref<16x128xf32, #tpu.memory_space<vmem>>, %arg6: memref<64x128xf32, #tpu.memory_space<vmem>>, %arg7: memref<64x128xf32, #tpu.memory_space<vmem>>, %arg8: memref<8x32xf32, #tpu.memory_space<vmem>>, %arg9: memref<64x16xf32, #tpu.memory_space<vmem>>, %arg10: memref<64x16xf32, #tpu.memory_space<vmem>>) attributes {dimension_semantics = [#tpu.dimension_semantics<arbitrary>], iteration_bounds = array<i64: 1>, scalar_prefetch = 0 : i64, scratch_operands = 3 : i64, tpu.core_type = #tpu.core_type<tc>, window_params = [{transform_indices = @transform_0, window_bounds = array<i64: 64, 96>}, {pipeline_mode = #tpu.pipeline_mode<synchronous>, transform_indices = @transform_1, window_bounds = array<i64: 32, 96>}, {pipeline_mode = #tpu.pipeline_mode<synchronous>, transform_indices = @transform_2, window_bounds = array<i64: 1, 32>}, {pipeline_mode = #tpu.pipeline_mode<synchronous>, transform_indices = @transform_3, window_bounds = array<i64: 16, 128>}, {pipeline_mode = #tpu.pipeline_mode<synchronous>, transform_indices = @transform_4, window_bounds = array<i64: 16, 128>}, {transform_indices = @transform_5, window_bounds = array<i64: 64, 128>}, {transform_indices = @transform_6, window_bounds = array<i64: 64, 128>}]} {
    %c0_i32 = arith.constant 0 : i32
    %0 = arith.cmpi eq, %arg0, %c0_i32 : i32
    %1 = arith.extui %0 : i1 to i32
    %c0_i32_0 = arith.constant 0 : i32
    %2 = arith.cmpi ne, %1, %c0_i32_0 : i32
    scf.if %2 {
      %cst_94 = arith.constant 0.000000e+00 : f32
      %305 = vector.broadcast %cst_94 : f32 to vector<8x32xf32>
      %c0_95 = arith.constant 0 : index
      %c0_96 = arith.constant 0 : index
      %306 = vector.load %arg8[%c0_95, %c0_96] : memref<8x32xf32, #tpu.memory_space<vmem>>, vector<8x32xf32>
      tpu.vector_store %arg8[%c0_95, %c0_96], %305 {strides = array<i32>} : memref<8x32xf32, #tpu.memory_space<vmem>>, vector<8x32xf32>,
    } else {
    }
    %c0 = arith.constant 0 : index
    %c0_1 = arith.constant 0 : index
    %3 = vector.load %arg2[%c0, %c0_1] : memref<32x96xbf16, #tpu.memory_space<vmem>>, vector<32x96xbf16>
    %c0_2 = arith.constant 0 : index
    %c0_3 = arith.constant 0 : index
    %4 = vector.load %arg3[%c0_2, %c0_3] : memref<1x32xf32, #tpu.memory_space<vmem>>, vector<1x32xf32>
    %5 = vector.shape_cast %4 : vector<1x32xf32> to vector<1x32xf32>
    %6 = vector.broadcast %5 : vector<1x32xf32> to vector<8x32xf32>
    %c0_4 = arith.constant 0 : index
    %c0_5 = arith.constant 0 : index
    %7 = vector.load %arg8[%c0_4, %c0_5] : memref<8x32xf32, #tpu.memory_space<vmem>>, vector<8x32xf32>
    %c0_i32_6 = arith.constant 0 : i32
    %c8_i32 = arith.constant 8 : i32
    %8 = arith.muli %c0_i32_6, %c8_i32 : i32
    %9 = tpu.assume_multiple %8, 8 : i32
    %10 = arith.index_cast %9 : i32 to index
    %c0_7 = arith.constant 0 : index
    %11 = vector.load %arg1[%10, %c0_7] : memref<64x96xf32, #tpu.memory_space<vmem>>, vector<8x96xf32>
    %12 = arith.truncf %7 : vector<8x32xf32> to vector<8x32xbf16>
    %cst = arith.constant dense<0.000000e+00> : vector<8x96xf32>
    %13 = tpu.matmul %12, %3, %cst {dimension_numbers = #tpu.dot_dimension_numbers<[1], [0], [0], [1], [0, 0, 1, 1], [], []>} : vector<8x32xbf16>, vector<32x96xbf16>, vector<8x96xf32> -> vector<8x96xf32>
    %14 = vector.extract_strided_slice %11 {offsets = [0, 0], sizes = [8, 64], strides = [1, 1]} : vector<8x96xf32> to vector<8x64xf32>
    %15 = vector.extract_strided_slice %13 {offsets = [0, 0], sizes = [8, 64], strides = [1, 1]} : vector<8x96xf32> to vector<8x64xf32>
    %16 = arith.addf %14, %15 : vector<8x64xf32>
    %17 = arith.negf %16 : vector<8x64xf32>
    %18 = math.exp %17 : vector<8x64xf32>
    %cst_8 = arith.constant 1.000000e+00 : f32
    %19 = vector.broadcast %cst_8 : f32 to vector<8x64xf32>
    %20 = arith.addf %19, %18 : vector<8x64xf32>
    %21 = arith.divf %19, %20 : vector<8x64xf32>
    %22 = vector.extract_strided_slice %21 {offsets = [0, 0], sizes = [8, 32], strides = [1, 1]} : vector<8x64xf32> to vector<8x32xf32>
    %23 = vector.extract_strided_slice %21 {offsets = [0, 32], sizes = [8, 32], strides = [1, 1]} : vector<8x64xf32> to vector<8x32xf32>
    %24 = vector.extract_strided_slice %11 {offsets = [0, 64], sizes = [8, 32], strides = [1, 1]} : vector<8x96xf32> to vector<8x32xf32>
    %25 = vector.extract_strided_slice %13 {offsets = [0, 64], sizes = [8, 32], strides = [1, 1]} : vector<8x96xf32> to vector<8x32xf32>
    %26 = arith.addf %25, %6 : vector<8x32xf32>
    %27 = arith.mulf %22, %26 : vector<8x32xf32>
    %28 = arith.addf %24, %27 : vector<8x32xf32>
    %29 = math.tanh %28 : vector<8x32xf32>
    %cst_9 = arith.constant 1.000000e+00 : f32
    %30 = vector.broadcast %cst_9 : f32 to vector<8x32xf32>
    %31 = arith.subf %30, %23 : vector<8x32xf32>
    %32 = arith.mulf %31, %29 : vector<8x32xf32>
    %33 = arith.mulf %23, %7 : vector<8x32xf32>
    %34 = arith.addf %32, %33 : vector<8x32xf32>
    %35 = vector.extract_strided_slice %34 {offsets = [0, 0], sizes = [8, 16], strides = [1, 1]} : vector<8x32xf32> to vector<8x16xf32>
    %36 = arith.index_cast %9 : i32 to index
    %c0_10 = arith.constant 0 : index
    %37 = vector.load %arg9[%36, %c0_10] : memref<64x16xf32, #tpu.memory_space<vmem>>, vector<8x16xf32>
    tpu.vector_store %arg9[%36, %c0_10], %35 {strides = array<i32>} : memref<64x16xf32, #tpu.memory_space<vmem>>, vector<8x16xf32>,
    %c7_i32 = arith.constant 7 : i32
    %38 = arith.subi %c7_i32, %c0_i32_6 : i32
    %c8_i32_11 = arith.constant 8 : i32
    %39 = arith.muli %38, %c8_i32_11 : i32
    %40 = tpu.assume_multiple %39, 8 : i32
    %41 = vector.extract_strided_slice %34 {offsets = [0, 16], sizes = [8, 16], strides = [1, 1]} : vector<8x32xf32> to vector<8x16xf32>
    %42 = arith.index_cast %40 : i32 to index
    %c0_12 = arith.constant 0 : index
    %43 = vector.load %arg10[%42, %c0_12] : memref<64x16xf32, #tpu.memory_space<vmem>>, vector<8x16xf32>
    tpu.vector_store %arg10[%42, %c0_12], %41 {strides = array<i32>} : memref<64x16xf32, #tpu.memory_space<vmem>>, vector<8x16xf32>,
    %c1_i32 = arith.constant 1 : i32
    %c8_i32_13 = arith.constant 8 : i32
    %44 = arith.muli %c1_i32, %c8_i32_13 : i32
    %45 = tpu.assume_multiple %44, 8 : i32
    %46 = arith.index_cast %45 : i32 to index
    %c0_14 = arith.constant 0 : index
    %47 = vector.load %arg1[%46, %c0_14] : memref<64x96xf32, #tpu.memory_space<vmem>>, vector<8x96xf32>
    %48 = arith.truncf %34 : vector<8x32xf32> to vector<8x32xbf16>
    %cst_15 = arith.constant dense<0.000000e+00> : vector<8x96xf32>
    %49 = tpu.matmul %48, %3, %cst_15 {dimension_numbers = #tpu.dot_dimension_numbers<[1], [0], [0], [1], [0, 0, 1, 1], [], []>} : vector<8x32xbf16>, vector<32x96xbf16>, vector<8x96xf32> -> vector<8x96xf32>
    %50 = vector.extract_strided_slice %47 {offsets = [0, 0], sizes = [8, 64], strides = [1, 1]} : vector<8x96xf32> to vector<8x64xf32>
    %51 = vector.extract_strided_slice %49 {offsets = [0, 0], sizes = [8, 64], strides = [1, 1]} : vector<8x96xf32> to vector<8x64xf32>
    %52 = arith.addf %50, %51 : vector<8x64xf32>
    %53 = arith.negf %52 : vector<8x64xf32>
    %54 = math.exp %53 : vector<8x64xf32>
    %cst_16 = arith.constant 1.000000e+00 : f32
    %55 = vector.broadcast %cst_16 : f32 to vector<8x64xf32>
    %56 = arith.addf %55, %54 : vector<8x64xf32>
    %57 = arith.divf %55, %56 : vector<8x64xf32>
    %58 = vector.extract_strided_slice %57 {offsets = [0, 0], sizes = [8, 32], strides = [1, 1]} : vector<8x64xf32> to vector<8x32xf32>
    %59 = vector.extract_strided_slice %57 {offsets = [0, 32], sizes = [8, 32], strides = [1, 1]} : vector<8x64xf32> to vector<8x32xf32>
    %60 = vector.extract_strided_slice %47 {offsets = [0, 64], sizes = [8, 32], strides = [1, 1]} : vector<8x96xf32> to vector<8x32xf32>
    %61 = vector.extract_strided_slice %49 {offsets = [0, 64], sizes = [8, 32], strides = [1, 1]} : vector<8x96xf32> to vector<8x32xf32>
    %62 = arith.addf %61, %6 : vector<8x32xf32>
    %63 = arith.mulf %58, %62 : vector<8x32xf32>
    %64 = arith.addf %60, %63 : vector<8x32xf32>
    %65 = math.tanh %64 : vector<8x32xf32>
    %cst_17 = arith.constant 1.000000e+00 : f32
    %66 = vector.broadcast %cst_17 : f32 to vector<8x32xf32>
    %67 = arith.subf %66, %59 : vector<8x32xf32>
    %68 = arith.mulf %67, %65 : vector<8x32xf32>
    %69 = arith.mulf %59, %34 : vector<8x32xf32>
    %70 = arith.addf %68, %69 : vector<8x32xf32>
    %71 = vector.extract_strided_slice %70 {offsets = [0, 0], sizes = [8, 16], strides = [1, 1]} : vector<8x32xf32> to vector<8x16xf32>
    %72 = arith.index_cast %45 : i32 to index
    %c0_18 = arith.constant 0 : index
    %73 = vector.load %arg9[%72, %c0_18] : memref<64x16xf32, #tpu.memory_space<vmem>>, vector<8x16xf32>
    tpu.vector_store %arg9[%72, %c0_18], %71 {strides = array<i32>} : memref<64x16xf32, #tpu.memory_space<vmem>>, vector<8x16xf32>,
    %c7_i32_19 = arith.constant 7 : i32
    %74 = arith.subi %c7_i32_19, %c1_i32 : i32
    %c8_i32_20 = arith.constant 8 : i32
    %75 = arith.muli %74, %c8_i32_20 : i32
    %76 = tpu.assume_multiple %75, 8 : i32
    %77 = vector.extract_strided_slice %70 {offsets = [0, 16], sizes = [8, 16], strides = [1, 1]} : vector<8x32xf32> to vector<8x16xf32>
    %78 = arith.index_cast %76 : i32 to index
    %c0_21 = arith.constant 0 : index
    %79 = vector.load %arg10[%78, %c0_21] : memref<64x16xf32, #tpu.memory_space<vmem>>, vector<8x16xf32>
    tpu.vector_store %arg10[%78, %c0_21], %77 {strides = array<i32>} : memref<64x16xf32, #tpu.memory_space<vmem>>, vector<8x16xf32>,
    %c2_i32 = arith.constant 2 : i32
    %c8_i32_22 = arith.constant 8 : i32
    %80 = arith.muli %c2_i32, %c8_i32_22 : i32
    %81 = tpu.assume_multiple %80, 8 : i32
    %82 = arith.index_cast %81 : i32 to index
    %c0_23 = arith.constant 0 : index
    %83 = vector.load %arg1[%82, %c0_23] : memref<64x96xf32, #tpu.memory_space<vmem>>, vector<8x96xf32>
    %84 = arith.truncf %70 : vector<8x32xf32> to vector<8x32xbf16>
    %cst_24 = arith.constant dense<0.000000e+00> : vector<8x96xf32>
    %85 = tpu.matmul %84, %3, %cst_24 {dimension_numbers = #tpu.dot_dimension_numbers<[1], [0], [0], [1], [0, 0, 1, 1], [], []>} : vector<8x32xbf16>, vector<32x96xbf16>, vector<8x96xf32> -> vector<8x96xf32>
    %86 = vector.extract_strided_slice %83 {offsets = [0, 0], sizes = [8, 64], strides = [1, 1]} : vector<8x96xf32> to vector<8x64xf32>
    %87 = vector.extract_strided_slice %85 {offsets = [0, 0], sizes = [8, 64], strides = [1, 1]} : vector<8x96xf32> to vector<8x64xf32>
    %88 = arith.addf %86, %87 : vector<8x64xf32>
    %89 = arith.negf %88 : vector<8x64xf32>
    %90 = math.exp %89 : vector<8x64xf32>
    %cst_25 = arith.constant 1.000000e+00 : f32
    %91 = vector.broadcast %cst_25 : f32 to vector<8x64xf32>
    %92 = arith.addf %91, %90 : vector<8x64xf32>
    %93 = arith.divf %91, %92 : vector<8x64xf32>
    %94 = vector.extract_strided_slice %93 {offsets = [0, 0], sizes = [8, 32], strides = [1, 1]} : vector<8x64xf32> to vector<8x32xf32>
    %95 = vector.extract_strided_slice %93 {offsets = [0, 32], sizes = [8, 32], strides = [1, 1]} : vector<8x64xf32> to vector<8x32xf32>
    %96 = vector.extract_strided_slice %83 {offsets = [0, 64], sizes = [8, 32], strides = [1, 1]} : vector<8x96xf32> to vector<8x32xf32>
    %97 = vector.extract_strided_slice %85 {offsets = [0, 64], sizes = [8, 32], strides = [1, 1]} : vector<8x96xf32> to vector<8x32xf32>
    %98 = arith.addf %97, %6 : vector<8x32xf32>
    %99 = arith.mulf %94, %98 : vector<8x32xf32>
    %100 = arith.addf %96, %99 : vector<8x32xf32>
    %101 = math.tanh %100 : vector<8x32xf32>
    %cst_26 = arith.constant 1.000000e+00 : f32
    %102 = vector.broadcast %cst_26 : f32 to vector<8x32xf32>
    %103 = arith.subf %102, %95 : vector<8x32xf32>
    %104 = arith.mulf %103, %101 : vector<8x32xf32>
    %105 = arith.mulf %95, %70 : vector<8x32xf32>
    %106 = arith.addf %104, %105 : vector<8x32xf32>
    %107 = vector.extract_strided_slice %106 {offsets = [0, 0], sizes = [8, 16], strides = [1, 1]} : vector<8x32xf32> to vector<8x16xf32>
    %108 = arith.index_cast %81 : i32 to index
    %c0_27 = arith.constant 0 : index
    %109 = vector.load %arg9[%108, %c0_27] : memref<64x16xf32, #tpu.memory_space<vmem>>, vector<8x16xf32>
    tpu.vector_store %arg9[%108, %c0_27], %107 {strides = array<i32>} : memref<64x16xf32, #tpu.memory_space<vmem>>, vector<8x16xf32>,
    %c7_i32_28 = arith.constant 7 : i32
    %110 = arith.subi %c7_i32_28, %c2_i32 : i32
    %c8_i32_29 = arith.constant 8 : i32
    %111 = arith.muli %110, %c8_i32_29 : i32
    %112 = tpu.assume_multiple %111, 8 : i32
    %113 = vector.extract_strided_slice %106 {offsets = [0, 16], sizes = [8, 16], strides = [1, 1]} : vector<8x32xf32> to vector<8x16xf32>
    %114 = arith.index_cast %112 : i32 to index
    %c0_30 = arith.constant 0 : index
    %115 = vector.load %arg10[%114, %c0_30] : memref<64x16xf32, #tpu.memory_space<vmem>>, vector<8x16xf32>
    tpu.vector_store %arg10[%114, %c0_30], %113 {strides = array<i32>} : memref<64x16xf32, #tpu.memory_space<vmem>>, vector<8x16xf32>,
    %c3_i32 = arith.constant 3 : i32
    %c8_i32_31 = arith.constant 8 : i32
    %116 = arith.muli %c3_i32, %c8_i32_31 : i32
    %117 = tpu.assume_multiple %116, 8 : i32
    %118 = arith.index_cast %117 : i32 to index
    %c0_32 = arith.constant 0 : index
    %119 = vector.load %arg1[%118, %c0_32] : memref<64x96xf32, #tpu.memory_space<vmem>>, vector<8x96xf32>
    %120 = arith.truncf %106 : vector<8x32xf32> to vector<8x32xbf16>
    %cst_33 = arith.constant dense<0.000000e+00> : vector<8x96xf32>
    %121 = tpu.matmul %120, %3, %cst_33 {dimension_numbers = #tpu.dot_dimension_numbers<[1], [0], [0], [1], [0, 0, 1, 1], [], []>} : vector<8x32xbf16>, vector<32x96xbf16>, vector<8x96xf32> -> vector<8x96xf32>
    %122 = vector.extract_strided_slice %119 {offsets = [0, 0], sizes = [8, 64], strides = [1, 1]} : vector<8x96xf32> to vector<8x64xf32>
    %123 = vector.extract_strided_slice %121 {offsets = [0, 0], sizes = [8, 64], strides = [1, 1]} : vector<8x96xf32> to vector<8x64xf32>
    %124 = arith.addf %122, %123 : vector<8x64xf32>
    %125 = arith.negf %124 : vector<8x64xf32>
    %126 = math.exp %125 : vector<8x64xf32>
    %cst_34 = arith.constant 1.000000e+00 : f32
    %127 = vector.broadcast %cst_34 : f32 to vector<8x64xf32>
    %128 = arith.addf %127, %126 : vector<8x64xf32>
    %129 = arith.divf %127, %128 : vector<8x64xf32>
    %130 = vector.extract_strided_slice %129 {offsets = [0, 0], sizes = [8, 32], strides = [1, 1]} : vector<8x64xf32> to vector<8x32xf32>
    %131 = vector.extract_strided_slice %129 {offsets = [0, 32], sizes = [8, 32], strides = [1, 1]} : vector<8x64xf32> to vector<8x32xf32>
    %132 = vector.extract_strided_slice %119 {offsets = [0, 64], sizes = [8, 32], strides = [1, 1]} : vector<8x96xf32> to vector<8x32xf32>
    %133 = vector.extract_strided_slice %121 {offsets = [0, 64], sizes = [8, 32], strides = [1, 1]} : vector<8x96xf32> to vector<8x32xf32>
    %134 = arith.addf %133, %6 : vector<8x32xf32>
    %135 = arith.mulf %130, %134 : vector<8x32xf32>
    %136 = arith.addf %132, %135 : vector<8x32xf32>
    %137 = math.tanh %136 : vector<8x32xf32>
    %cst_35 = arith.constant 1.000000e+00 : f32
    %138 = vector.broadcast %cst_35 : f32 to vector<8x32xf32>
    %139 = arith.subf %138, %131 : vector<8x32xf32>
    %140 = arith.mulf %139, %137 : vector<8x32xf32>
    %141 = arith.mulf %131, %106 : vector<8x32xf32>
    %142 = arith.addf %140, %141 : vector<8x32xf32>
    %143 = vector.extract_strided_slice %142 {offsets = [0, 0], sizes = [8, 16], strides = [1, 1]} : vector<8x32xf32> to vector<8x16xf32>
    %144 = arith.index_cast %117 : i32 to index
    %c0_36 = arith.constant 0 : index
    %145 = vector.load %arg9[%144, %c0_36] : memref<64x16xf32, #tpu.memory_space<vmem>>, vector<8x16xf32>
    tpu.vector_store %arg9[%144, %c0_36], %143 {strides = array<i32>} : memref<64x16xf32, #tpu.memory_space<vmem>>, vector<8x16xf32>,
    %c7_i32_37 = arith.constant 7 : i32
    %146 = arith.subi %c7_i32_37, %c3_i32 : i32
    %c8_i32_38 = arith.constant 8 : i32
    %147 = arith.muli %146, %c8_i32_38 : i32
    %148 = tpu.assume_multiple %147, 8 : i32
    %149 = vector.extract_strided_slice %142 {offsets = [0, 16], sizes = [8, 16], strides = [1, 1]} : vector<8x32xf32> to vector<8x16xf32>
    %150 = arith.index_cast %148 : i32 to index
    %c0_39 = arith.constant 0 : index
    %151 = vector.load %arg10[%150, %c0_39] : memref<64x16xf32, #tpu.memory_space<vmem>>, vector<8x16xf32>
    tpu.vector_store %arg10[%150, %c0_39], %149 {strides = array<i32>} : memref<64x16xf32, #tpu.memory_space<vmem>>, vector<8x16xf32>,
    %c4_i32 = arith.constant 4 : i32
    %c8_i32_40 = arith.constant 8 : i32
    %152 = arith.muli %c4_i32, %c8_i32_40 : i32
    %153 = tpu.assume_multiple %152, 8 : i32
    %154 = arith.index_cast %153 : i32 to index
    %c0_41 = arith.constant 0 : index
    %155 = vector.load %arg1[%154, %c0_41] : memref<64x96xf32, #tpu.memory_space<vmem>>, vector<8x96xf32>
    %156 = arith.truncf %142 : vector<8x32xf32> to vector<8x32xbf16>
    %cst_42 = arith.constant dense<0.000000e+00> : vector<8x96xf32>
    %157 = tpu.matmul %156, %3, %cst_42 {dimension_numbers = #tpu.dot_dimension_numbers<[1], [0], [0], [1], [0, 0, 1, 1], [], []>} : vector<8x32xbf16>, vector<32x96xbf16>, vector<8x96xf32> -> vector<8x96xf32>
    %158 = vector.extract_strided_slice %155 {offsets = [0, 0], sizes = [8, 64], strides = [1, 1]} : vector<8x96xf32> to vector<8x64xf32>
    %159 = vector.extract_strided_slice %157 {offsets = [0, 0], sizes = [8, 64], strides = [1, 1]} : vector<8x96xf32> to vector<8x64xf32>
    %160 = arith.addf %158, %159 : vector<8x64xf32>
    %161 = arith.negf %160 : vector<8x64xf32>
    %162 = math.exp %161 : vector<8x64xf32>
    %cst_43 = arith.constant 1.000000e+00 : f32
    %163 = vector.broadcast %cst_43 : f32 to vector<8x64xf32>
    %164 = arith.addf %163, %162 : vector<8x64xf32>
    %165 = arith.divf %163, %164 : vector<8x64xf32>
    %166 = vector.extract_strided_slice %165 {offsets = [0, 0], sizes = [8, 32], strides = [1, 1]} : vector<8x64xf32> to vector<8x32xf32>
    %167 = vector.extract_strided_slice %165 {offsets = [0, 32], sizes = [8, 32], strides = [1, 1]} : vector<8x64xf32> to vector<8x32xf32>
    %168 = vector.extract_strided_slice %155 {offsets = [0, 64], sizes = [8, 32], strides = [1, 1]} : vector<8x96xf32> to vector<8x32xf32>
    %169 = vector.extract_strided_slice %157 {offsets = [0, 64], sizes = [8, 32], strides = [1, 1]} : vector<8x96xf32> to vector<8x32xf32>
    %170 = arith.addf %169, %6 : vector<8x32xf32>
    %171 = arith.mulf %166, %170 : vector<8x32xf32>
    %172 = arith.addf %168, %171 : vector<8x32xf32>
    %173 = math.tanh %172 : vector<8x32xf32>
    %cst_44 = arith.constant 1.000000e+00 : f32
    %174 = vector.broadcast %cst_44 : f32 to vector<8x32xf32>
    %175 = arith.subf %174, %167 : vector<8x32xf32>
    %176 = arith.mulf %175, %173 : vector<8x32xf32>
    %177 = arith.mulf %167, %142 : vector<8x32xf32>
    %178 = arith.addf %176, %177 : vector<8x32xf32>
    %179 = vector.extract_strided_slice %178 {offsets = [0, 0], sizes = [8, 16], strides = [1, 1]} : vector<8x32xf32> to vector<8x16xf32>
    %180 = arith.index_cast %153 : i32 to index
    %c0_45 = arith.constant 0 : index
    %181 = vector.load %arg9[%180, %c0_45] : memref<64x16xf32, #tpu.memory_space<vmem>>, vector<8x16xf32>
    tpu.vector_store %arg9[%180, %c0_45], %179 {strides = array<i32>} : memref<64x16xf32, #tpu.memory_space<vmem>>, vector<8x16xf32>,
    %c7_i32_46 = arith.constant 7 : i32
    %182 = arith.subi %c7_i32_46, %c4_i32 : i32
    %c8_i32_47 = arith.constant 8 : i32
    %183 = arith.muli %182, %c8_i32_47 : i32
    %184 = tpu.assume_multiple %183, 8 : i32
    %185 = vector.extract_strided_slice %178 {offsets = [0, 16], sizes = [8, 16], strides = [1, 1]} : vector<8x32xf32> to vector<8x16xf32>
    %186 = arith.index_cast %184 : i32 to index
    %c0_48 = arith.constant 0 : index
    %187 = vector.load %arg10[%186, %c0_48] : memref<64x16xf32, #tpu.memory_space<vmem>>, vector<8x16xf32>
    tpu.vector_store %arg10[%186, %c0_48], %185 {strides = array<i32>} : memref<64x16xf32, #tpu.memory_space<vmem>>, vector<8x16xf32>,
    %c5_i32 = arith.constant 5 : i32
    %c8_i32_49 = arith.constant 8 : i32
    %188 = arith.muli %c5_i32, %c8_i32_49 : i32
    %189 = tpu.assume_multiple %188, 8 : i32
    %190 = arith.index_cast %189 : i32 to index
    %c0_50 = arith.constant 0 : index
    %191 = vector.load %arg1[%190, %c0_50] : memref<64x96xf32, #tpu.memory_space<vmem>>, vector<8x96xf32>
    %192 = arith.truncf %178 : vector<8x32xf32> to vector<8x32xbf16>
    %cst_51 = arith.constant dense<0.000000e+00> : vector<8x96xf32>
    %193 = tpu.matmul %192, %3, %cst_51 {dimension_numbers = #tpu.dot_dimension_numbers<[1], [0], [0], [1], [0, 0, 1, 1], [], []>} : vector<8x32xbf16>, vector<32x96xbf16>, vector<8x96xf32> -> vector<8x96xf32>
    %194 = vector.extract_strided_slice %191 {offsets = [0, 0], sizes = [8, 64], strides = [1, 1]} : vector<8x96xf32> to vector<8x64xf32>
    %195 = vector.extract_strided_slice %193 {offsets = [0, 0], sizes = [8, 64], strides = [1, 1]} : vector<8x96xf32> to vector<8x64xf32>
    %196 = arith.addf %194, %195 : vector<8x64xf32>
    %197 = arith.negf %196 : vector<8x64xf32>
    %198 = math.exp %197 : vector<8x64xf32>
    %cst_52 = arith.constant 1.000000e+00 : f32
    %199 = vector.broadcast %cst_52 : f32 to vector<8x64xf32>
    %200 = arith.addf %199, %198 : vector<8x64xf32>
    %201 = arith.divf %199, %200 : vector<8x64xf32>
    %202 = vector.extract_strided_slice %201 {offsets = [0, 0], sizes = [8, 32], strides = [1, 1]} : vector<8x64xf32> to vector<8x32xf32>
    %203 = vector.extract_strided_slice %201 {offsets = [0, 32], sizes = [8, 32], strides = [1, 1]} : vector<8x64xf32> to vector<8x32xf32>
    %204 = vector.extract_strided_slice %191 {offsets = [0, 64], sizes = [8, 32], strides = [1, 1]} : vector<8x96xf32> to vector<8x32xf32>
    %205 = vector.extract_strided_slice %193 {offsets = [0, 64], sizes = [8, 32], strides = [1, 1]} : vector<8x96xf32> to vector<8x32xf32>
    %206 = arith.addf %205, %6 : vector<8x32xf32>
    %207 = arith.mulf %202, %206 : vector<8x32xf32>
    %208 = arith.addf %204, %207 : vector<8x32xf32>
    %209 = math.tanh %208 : vector<8x32xf32>
    %cst_53 = arith.constant 1.000000e+00 : f32
    %210 = vector.broadcast %cst_53 : f32 to vector<8x32xf32>
    %211 = arith.subf %210, %203 : vector<8x32xf32>
    %212 = arith.mulf %211, %209 : vector<8x32xf32>
    %213 = arith.mulf %203, %178 : vector<8x32xf32>
    %214 = arith.addf %212, %213 : vector<8x32xf32>
    %215 = vector.extract_strided_slice %214 {offsets = [0, 0], sizes = [8, 16], strides = [1, 1]} : vector<8x32xf32> to vector<8x16xf32>
    %216 = arith.index_cast %189 : i32 to index
    %c0_54 = arith.constant 0 : index
    %217 = vector.load %arg9[%216, %c0_54] : memref<64x16xf32, #tpu.memory_space<vmem>>, vector<8x16xf32>
    tpu.vector_store %arg9[%216, %c0_54], %215 {strides = array<i32>} : memref<64x16xf32, #tpu.memory_space<vmem>>, vector<8x16xf32>,
    %c7_i32_55 = arith.constant 7 : i32
    %218 = arith.subi %c7_i32_55, %c5_i32 : i32
    %c8_i32_56 = arith.constant 8 : i32
    %219 = arith.muli %218, %c8_i32_56 : i32
    %220 = tpu.assume_multiple %219, 8 : i32
    %221 = vector.extract_strided_slice %214 {offsets = [0, 16], sizes = [8, 16], strides = [1, 1]} : vector<8x32xf32> to vector<8x16xf32>
    %222 = arith.index_cast %220 : i32 to index
    %c0_57 = arith.constant 0 : index
    %223 = vector.load %arg10[%222, %c0_57] : memref<64x16xf32, #tpu.memory_space<vmem>>, vector<8x16xf32>
    tpu.vector_store %arg10[%222, %c0_57], %221 {strides = array<i32>} : memref<64x16xf32, #tpu.memory_space<vmem>>, vector<8x16xf32>,
    %c6_i32 = arith.constant 6 : i32
    %c8_i32_58 = arith.constant 8 : i32
    %224 = arith.muli %c6_i32, %c8_i32_58 : i32
    %225 = tpu.assume_multiple %224, 8 : i32
    %226 = arith.index_cast %225 : i32 to index
    %c0_59 = arith.constant 0 : index
    %227 = vector.load %arg1[%226, %c0_59] : memref<64x96xf32, #tpu.memory_space<vmem>>, vector<8x96xf32>
    %228 = arith.truncf %214 : vector<8x32xf32> to vector<8x32xbf16>
    %cst_60 = arith.constant dense<0.000000e+00> : vector<8x96xf32>
    %229 = tpu.matmul %228, %3, %cst_60 {dimension_numbers = #tpu.dot_dimension_numbers<[1], [0], [0], [1], [0, 0, 1, 1], [], []>} : vector<8x32xbf16>, vector<32x96xbf16>, vector<8x96xf32> -> vector<8x96xf32>
    %230 = vector.extract_strided_slice %227 {offsets = [0, 0], sizes = [8, 64], strides = [1, 1]} : vector<8x96xf32> to vector<8x64xf32>
    %231 = vector.extract_strided_slice %229 {offsets = [0, 0], sizes = [8, 64], strides = [1, 1]} : vector<8x96xf32> to vector<8x64xf32>
    %232 = arith.addf %230, %231 : vector<8x64xf32>
    %233 = arith.negf %232 : vector<8x64xf32>
    %234 = math.exp %233 : vector<8x64xf32>
    %cst_61 = arith.constant 1.000000e+00 : f32
    %235 = vector.broadcast %cst_61 : f32 to vector<8x64xf32>
    %236 = arith.addf %235, %234 : vector<8x64xf32>
    %237 = arith.divf %235, %236 : vector<8x64xf32>
    %238 = vector.extract_strided_slice %237 {offsets = [0, 0], sizes = [8, 32], strides = [1, 1]} : vector<8x64xf32> to vector<8x32xf32>
    %239 = vector.extract_strided_slice %237 {offsets = [0, 32], sizes = [8, 32], strides = [1, 1]} : vector<8x64xf32> to vector<8x32xf32>
    %240 = vector.extract_strided_slice %227 {offsets = [0, 64], sizes = [8, 32], strides = [1, 1]} : vector<8x96xf32> to vector<8x32xf32>
    %241 = vector.extract_strided_slice %229 {offsets = [0, 64], sizes = [8, 32], strides = [1, 1]} : vector<8x96xf32> to vector<8x32xf32>
    %242 = arith.addf %241, %6 : vector<8x32xf32>
    %243 = arith.mulf %238, %242 : vector<8x32xf32>
    %244 = arith.addf %240, %243 : vector<8x32xf32>
    %245 = math.tanh %244 : vector<8x32xf32>
    %cst_62 = arith.constant 1.000000e+00 : f32
    %246 = vector.broadcast %cst_62 : f32 to vector<8x32xf32>
    %247 = arith.subf %246, %239 : vector<8x32xf32>
    %248 = arith.mulf %247, %245 : vector<8x32xf32>
    %249 = arith.mulf %239, %214 : vector<8x32xf32>
    %250 = arith.addf %248, %249 : vector<8x32xf32>
    %251 = vector.extract_strided_slice %250 {offsets = [0, 0], sizes = [8, 16], strides = [1, 1]} : vector<8x32xf32> to vector<8x16xf32>
    %252 = arith.index_cast %225 : i32 to index
    %c0_63 = arith.constant 0 : index
    %253 = vector.load %arg9[%252, %c0_63] : memref<64x16xf32, #tpu.memory_space<vmem>>, vector<8x16xf32>
    tpu.vector_store %arg9[%252, %c0_63], %251 {strides = array<i32>} : memref<64x16xf32, #tpu.memory_space<vmem>>, vector<8x16xf32>,
    %c7_i32_64 = arith.constant 7 : i32
    %254 = arith.subi %c7_i32_64, %c6_i32 : i32
    %c8_i32_65 = arith.constant 8 : i32
    %255 = arith.muli %254, %c8_i32_65 : i32
    %256 = tpu.assume_multiple %255, 8 : i32
    %257 = vector.extract_strided_slice %250 {offsets = [0, 16], sizes = [8, 16], strides = [1, 1]} : vector<8x32xf32> to vector<8x16xf32>
    %258 = arith.index_cast %256 : i32 to index
    %c0_66 = arith.constant 0 : index
    %259 = vector.load %arg10[%258, %c0_66] : memref<64x16xf32, #tpu.memory_space<vmem>>, vector<8x16xf32>
    tpu.vector_store %arg10[%258, %c0_66], %257 {strides = array<i32>} : memref<64x16xf32, #tpu.memory_space<vmem>>, vector<8x16xf32>,
    %c7_i32_67 = arith.constant 7 : i32
    %c8_i32_68 = arith.constant 8 : i32
    %260 = arith.muli %c7_i32_67, %c8_i32_68 : i32
    %261 = tpu.assume_multiple %260, 8 : i32
    %262 = arith.index_cast %261 : i32 to index
    %c0_69 = arith.constant 0 : index
    %263 = vector.load %arg1[%262, %c0_69] : memref<64x96xf32, #tpu.memory_space<vmem>>, vector<8x96xf32>
    %264 = arith.truncf %250 : vector<8x32xf32> to vector<8x32xbf16>
    %cst_70 = arith.constant dense<0.000000e+00> : vector<8x96xf32>
    %265 = tpu.matmul %264, %3, %cst_70 {dimension_numbers = #tpu.dot_dimension_numbers<[1], [0], [0], [1], [0, 0, 1, 1], [], []>} : vector<8x32xbf16>, vector<32x96xbf16>, vector<8x96xf32> -> vector<8x96xf32>
    %266 = vector.extract_strided_slice %263 {offsets = [0, 0], sizes = [8, 64], strides = [1, 1]} : vector<8x96xf32> to vector<8x64xf32>
    %267 = vector.extract_strided_slice %265 {offsets = [0, 0], sizes = [8, 64], strides = [1, 1]} : vector<8x96xf32> to vector<8x64xf32>
    %268 = arith.addf %266, %267 : vector<8x64xf32>
    %269 = arith.negf %268 : vector<8x64xf32>
    %270 = math.exp %269 : vector<8x64xf32>
    %cst_71 = arith.constant 1.000000e+00 : f32
    %271 = vector.broadcast %cst_71 : f32 to vector<8x64xf32>
    %272 = arith.addf %271, %270 : vector<8x64xf32>
    %273 = arith.divf %271, %272 : vector<8x64xf32>
    %274 = vector.extract_strided_slice %273 {offsets = [0, 0], sizes = [8, 32], strides = [1, 1]} : vector<8x64xf32> to vector<8x32xf32>
    %275 = vector.extract_strided_slice %273 {offsets = [0, 32], sizes = [8, 32], strides = [1, 1]} : vector<8x64xf32> to vector<8x32xf32>
    %276 = vector.extract_strided_slice %263 {offsets = [0, 64], sizes = [8, 32], strides = [1, 1]} : vector<8x96xf32> to vector<8x32xf32>
    %277 = vector.extract_strided_slice %265 {offsets = [0, 64], sizes = [8, 32], strides = [1, 1]} : vector<8x96xf32> to vector<8x32xf32>
    %278 = arith.addf %277, %6 : vector<8x32xf32>
    %279 = arith.mulf %274, %278 : vector<8x32xf32>
    %280 = arith.addf %276, %279 : vector<8x32xf32>
    %281 = math.tanh %280 : vector<8x32xf32>
    %cst_72 = arith.constant 1.000000e+00 : f32
    %282 = vector.broadcast %cst_72 : f32 to vector<8x32xf32>
    %283 = arith.subf %282, %275 : vector<8x32xf32>
    %284 = arith.mulf %283, %281 : vector<8x32xf32>
    %285 = arith.mulf %275, %250 : vector<8x32xf32>
    %286 = arith.addf %284, %285 : vector<8x32xf32>
    %287 = vector.extract_strided_slice %286 {offsets = [0, 0], sizes = [8, 16], strides = [1, 1]} : vector<8x32xf32> to vector<8x16xf32>
    %288 = arith.index_cast %261 : i32 to index
    %c0_73 = arith.constant 0 : index
    %289 = vector.load %arg9[%288, %c0_73] : memref<64x16xf32, #tpu.memory_space<vmem>>, vector<8x16xf32>
    tpu.vector_store %arg9[%288, %c0_73], %287 {strides = array<i32>} : memref<64x16xf32, #tpu.memory_space<vmem>>, vector<8x16xf32>,
    %c7_i32_74 = arith.constant 7 : i32
    %290 = arith.subi %c7_i32_74, %c7_i32_67 : i32
    %c8_i32_75 = arith.constant 8 : i32
    %291 = arith.muli %290, %c8_i32_75 : i32
    %292 = tpu.assume_multiple %291, 8 : i32
    %293 = vector.extract_strided_slice %286 {offsets = [0, 16], sizes = [8, 16], strides = [1, 1]} : vector<8x32xf32> to vector<8x16xf32>
    %294 = arith.index_cast %292 : i32 to index
    %c0_76 = arith.constant 0 : index
    %295 = vector.load %arg10[%294, %c0_76] : memref<64x16xf32, #tpu.memory_space<vmem>>, vector<8x16xf32>
    tpu.vector_store %arg10[%294, %c0_76], %293 {strides = array<i32>} : memref<64x16xf32, #tpu.memory_space<vmem>>, vector<8x16xf32>,
    %c8_i32_77 = arith.constant 8 : i32
    %c0_78 = arith.constant 0 : index
    %c0_79 = arith.constant 0 : index
    %296 = vector.load %arg8[%c0_78, %c0_79] : memref<8x32xf32, #tpu.memory_space<vmem>>, vector<8x32xf32>
    tpu.vector_store %arg8[%c0_78, %c0_79], %286 {strides = array<i32>} : memref<8x32xf32, #tpu.memory_space<vmem>>, vector<8x32xf32>,
    %c0_80 = arith.constant 0 : index
    %c0_81 = arith.constant 0 : index
    %297 = vector.load %arg9[%c0_80, %c0_81] : memref<64x16xf32, #tpu.memory_space<vmem>>, vector<64x16xf32>
    %c0_82 = arith.constant 0 : index
    %c0_83 = arith.constant 0 : index
    %298 = vector.load %arg4[%c0_82, %c0_83] : memref<16x128xf32, #tpu.memory_space<vmem>>, vector<16x128xf32>
    %cst_84 = arith.constant dense<0.000000e+00> : vector<64x128xf32>
    %299 = tpu.matmul %297, %298, %cst_84 {dimension_numbers = #tpu.dot_dimension_numbers<[1], [0], [0], [1], [0, 0, 1, 1], [], []>, precision = #tpu.contract_precision<fp32>} : vector<64x16xf32>, vector<16x128xf32>, vector<64x128xf32> -> vector<64x128xf32>
    %c0_85 = arith.constant 0 : index
    %c0_86 = arith.constant 0 : index
    %300 = vector.load %arg6[%c0_85, %c0_86] : memref<64x128xf32, #tpu.memory_space<vmem>>, vector<64x128xf32>
    tpu.vector_store %arg6[%c0_85, %c0_86], %299 {strides = array<i32>} : memref<64x128xf32, #tpu.memory_space<vmem>>, vector<64x128xf32>,
    %c0_87 = arith.constant 0 : index
    %c0_88 = arith.constant 0 : index
    %301 = vector.load %arg10[%c0_87, %c0_88] : memref<64x16xf32, #tpu.memory_space<vmem>>, vector<64x16xf32>
    %c0_89 = arith.constant 0 : index
    %c0_90 = arith.constant 0 : index
    %302 = vector.load %arg5[%c0_89, %c0_90] : memref<16x128xf32, #tpu.memory_space<vmem>>, vector<16x128xf32>
    %cst_91 = arith.constant dense<0.000000e+00> : vector<64x128xf32>
    %303 = tpu.matmul %301, %302, %cst_91 {dimension_numbers = #tpu.dot_dimension_numbers<[1], [0], [0], [1], [0, 0, 1, 1], [], []>, precision = #tpu.contract_precision<fp32>} : vector<64x16xf32>, vector<16x128xf32>, vector<64x128xf32> -> vector<64x128xf32>
    %c0_92 = arith.constant 0 : index
    %c0_93 = arith.constant 0 : index
    %304 = vector.load %arg7[%c0_92, %c0_93] : memref<64x128xf32, #tpu.memory_space<vmem>>, vector<64x128xf32>
    tpu.vector_store %arg7[%c0_92, %c0_93], %303 {strides = array<i32>} : memref<64x128xf32, #tpu.memory_space<vmem>>, vector<64x128xf32>,
    return
  }
  func.func @transform_0(%arg0: i32) -> (i32, i32) {
    %c0_i32 = arith.constant 0 : i32
    %c0_i32_0 = arith.constant 0 : i32
    return %arg0, %c0_i32 : i32, i32
  }
  func.func @transform_1(%arg0: i32) -> (i32, i32) {
    %c0_i32 = arith.constant 0 : i32
    %c0_i32_0 = arith.constant 0 : i32
    %c0_i32_1 = arith.constant 0 : i32
    return %c0_i32, %c0_i32_0 : i32, i32
  }
  func.func @transform_2(%arg0: i32) -> (i32, i32) {
    %c0_i32 = arith.constant 0 : i32
    %c0_i32_0 = arith.constant 0 : i32
    %c0_i32_1 = arith.constant 0 : i32
    return %c0_i32, %c0_i32_0 : i32, i32
  }
  func.func @transform_3(%arg0: i32) -> (i32, i32) {
    %c0_i32 = arith.constant 0 : i32
    %c0_i32_0 = arith.constant 0 : i32
    %c0_i32_1 = arith.constant 0 : i32
    return %c0_i32, %c0_i32_0 : i32, i32
  }
  func.func @transform_4(%arg0: i32) -> (i32, i32) {
    %c0_i32 = arith.constant 0 : i32
    %c0_i32_0 = arith.constant 0 : i32
    %c0_i32_1 = arith.constant 0 : i32
    return %c0_i32, %c0_i32_0 : i32, i32
  }
  func.func @transform_5(%arg0: i32) -> (i32, i32) {
    %c0_i32 = arith.constant 0 : i32
    %c0_i32_0 = arith.constant 0 : i32
    return %arg0, %c0_i32 : i32, i32
  }
  func.func @transform_6(%arg0: i32) -> (i32, i32) {
    %c0_i32 = arith.constant 0 : i32
    %0 = arith.subi %c0_i32, %arg0 : i32
    %c0_i32_0 = arith.constant 0 : i32
    %c0_i32_1 = arith.constant 0 : i32
    return %0, %c0_i32_0 : i32, i32
  }
}

</mosaic_0001>

<bundles_post_ra>
// kernel: discriminator_pallas.1
= control target key start
LH: loop header
LB: loop body
LE: loop exit
PB: predicated region body
PF: predicated region fallthrough
CT: control target
= control target key end

     0   :  { %vm41_vm0 = vcmask 261120   ;;  %v3010_v0 = vmov 0.0   ;;  %vm3011_vm1 = vmmov 0   ;;  %s3012_s27 = smov 64   ;;  %s3014_s29 = smov 96   ;;  %vm150_vm2 = vcmask 130048   ;;  %s3643_s1 = inlined_call_operand.vmem [shape: bf16[32,96], index: 1, kind: input, shape index: {}]   ;;  %s3644_s2 = inlined_call_operand.vmem [shape: f32[1,32], index: 2, kind: input, shape index: {}]   ;;  %s3645_s0 = inlined_call_operand.vmem [shape: f32[64,96], index: 0, kind: input, shape index: {}]   ;;  %s3646_s3 = inlined_call_operand.vmem [shape: f32[16,128], index: 3, kind: input, shape index: {}]   ;;  %s3647_s4 = inlined_call_operand.vmem [shape: f32[16,128], index: 4, kind: input, shape index: {}]   ;;  %s3648_s6 = inlined_call_operand.vmem [shape: f32[64,128], index: 6, kind: output, shape index: {1}]   ;;  %s3649_s5 = inlined_call_operand.vmem [shape: f32[64,128], index: 5, kind: output, shape index: {0}]  }
   0x1   :  { %2570 = vmatprep.subr.bf16.mxu0 %v3010_v0  ;;  %v3055_v1 = vld [vmem:[%s3643_s1] sm:$0xff]   ;;  %2574 = vmatprep.mubr.msk.bf16.mxu0 %vm3011_vm1, %v3010_v0  ;;  %42 = vst.msk [vmem:[#allocation2] sm:$0xff] %vm41_vm0, %v3010_v0  ;;  %v3068_v2 = vld [vmem:[%s3643_s1 + $0x8] sm:$0xff]   ;;  %s3013_s1 = smov 32   ;;  %v2408_v59 = vld [vmem:[%s3645_s0 + $0x10] sm:$0xff] }
   0x2   :  { %2578 = vmatprep.subr.bf16.mxu1 %v3010_v0  ;;  %2582 = vmatprep.mubr.msk.bf16.mxu1 %vm3011_vm1, %v3010_v0  ;;  %v2400_v3 = vld [vmem:[%s3644_s2] ss:$0 sm:$0xff]  ;;  %v2405_v36 = vld [vmem:[%s3645_s0 + $0x8] sm:$0xff] }
   0x3   :  { %2571 = vmatpush3.bf16.msra.mxu0 %v3055_v1  ;;  %2579 = vmatpush3.bf16.msra.mxu1 %v3055_v1  ;;  %v54_v12 = vld [vmem:[%s3645_s0] sm:$0xff] }
   0x4   :  { %2572 = vmatprep.subr.bf16.mxu0 %v3010_v0  ;;  %119 = vrot.lane.b32.xlu0 %v2400_v3, %s3012_s27 }
   0x5   :  { %2580 = vmatprep.subr.bf16.mxu1 %v3010_v0 }
   0x7   :  { %2573 = vmatpush3.bf16.msra.mxu0 %v3068_v2  ;;  %2581 = vmatpush3.bf16.msra.mxu1 %v3068_v2 }
   0x8   :  { %v53_v4 = vld [vmem:[#allocation2] sm:$0xff]  ;;  %2586 = vmatprep.subr.bf16.mxu0 %v3010_v0  ;;  %2594 = vmatprep.subr.bf16.mxu1 %v3010_v0 }
   0x9   :  { %v55_v5 = vpack.c.bf16 %v53_v4, %v53_v4 }
   0xb   :  { %2575 = vmatmul.mubr.msk.bf16.vlgmr.msra.gmra.mrb[0].mxu0 %vm41_vm0, %v55_v5 }
   0xc   :  { %2587 = vmatpush3.bf16.msra.mxu0 %v3055_v1  ;;  %2590 = vmatprep.mubr.msk.bf16.mxu0 %vm3011_vm1, %v3010_v0 }
   0xd   :  { %2588 = vmatprep.subr.bf16.mxu0 %v3010_v0 }
  0x10   :  { %2589 = vmatpush3.bf16.msra.mxu0 %v3068_v2 }
  0x11   :  { %2602 = vmatprep.subr.bf16.mxu0 %v3010_v0 }
  0x76   :  { %v3088_v6 = vpop.permute.xlu0 %119 }
  0xde   :  { %v106_v7 = vpop.f32.mrb[0].mxu0 }
  0xdf   :  { %v122_v8 = vadd.f32 %v3088_v6, %v106_v7  ;;  %v2576_v9 = vpop.f32.mrb[1].mxu0  ;;  %v112_v13 = vadd.f32 %v106_v7, %v54_v12 }
  0xe0   :  { %v109_v10 = vpop.f32.mrb[2].mxu0 }
  0xe1   :  { %124 = vrot.lane.b32.xlu0 %v122_v8, %s3012_s27  ;;  %v2577_v11 = vpop.f32.mrb[3].mxu0  ;;  %v2404_v14 = vmul.f32 -1.442695, %v112_v13 }
  0xe3   :  { %2962 = vpow2.f32 %v2404_v14 }
  0xe5   :  { %141 = vrot.lane.b32.xlu0 %v53_v4, %s3013_s1 }
  0xed   :  { %v2963_v15 = vpop.eup %2962 }
  0xee   :  { %v116_v16 = vadd.f32 1.0, %v2963_v15 }
  0xf0   :  { %2964 = vrcp.f32 %v116_v16 }
  0xfa   :  { %v2965_v17 = vpop.eup %2964 }
  0xfb   :  { %v134_v24 = vsub.f32 1.0, %v2965_v17 }
 0x153   :  { %v125_v18 = vpop.permute.xlu0 %124 }
 0x154   :  { %v127_v19 = vmul.f32 %v2965_v17, %v125_v18 }
 0x156   :  { %129 = vrot.lane.b32.xlu1 %v127_v19, %s3012_s27 }
 0x157   :  { %v142_v23 = vpop.permute.xlu0 %141 }
 0x158   :  { %v144_v26 = vmul.f32 %v2965_v17, %v142_v23 }
 0x1c8   :  { %v130_v20 = vpop.permute.xlu1 %129 }
 0x1c9   :  { %v132_v21 = vadd.f32 %v130_v20, %v54_v12 }
 0x1cb   :  { %2966 = vtanh.f32 %v132_v21 }
 0x1d5   :  { %v2967_v22 = vpop.eup %2966 }
 0x1d6   :  { %136 = vrot.lane.b32.xlu1 %v2967_v22, %s3014_s29  ;;  %v2411_v22 = vld [vmem:[%s3645_s0 + $0x18] sm:$0xff] }
 0x248   :  { %v137_v25 = vpop.permute.xlu1 %136 }
 0x249   :  { %v139_v27 = vmul.f32 %v137_v25, %v134_v24 }
 0x24b   :  { %v3097_v28 = vadd.f32 %v144_v26, %v139_v27 }
 0x24d   :  { %v159_v29 = vpack.c.bf16 %v3097_v28, %v3097_v28 }
 0x24f   :  { %161 = vrot.lane.b32.xlu1 %v159_v29, %s3014_s29 }
 0x2c1   :  { %v162_v30 = vpop.permute.xlu1 %161 }
 0x2c2   :  { %2583 = vmatmul.mubr.msk.bf16.vlgmr.msra.gmra.mrb[0].mxu1 %vm41_vm0, %v162_v30 }
 0x2c3   :  { %2595 = vmatpush3.bf16.msra.mxu1 %v3055_v1  ;;  %2598 = vmatprep.mubr.msk.bf16.mxu1 %vm3011_vm1, %v3010_v0 }
 0x2c4   :  { %2596 = vmatprep.subr.bf16.mxu1 %v3010_v0 }
 0x2c7   :  { %2597 = vmatpush3.bf16.msra.mxu1 %v3068_v2 }
 0x2c8   :  { %2610 = vmatprep.subr.bf16.mxu1 %v3010_v0 }
 0x395   :  { %v200_v31 = vpop.f32.mrb[0].mxu1 }
 0x396   :  { %v213_v32 = vadd.f32 %v200_v31, %v3088_v6  ;;  %v2584_v33 = vpop.f32.mrb[1].mxu1  ;;  %v206_v37 = vadd.f32 %v2405_v36, %v200_v31 }
 0x397   :  { %v203_v34 = vpop.f32.mrb[2].mxu1 }
 0x398   :  { %215 = vrot.lane.b32.xlu0 %v213_v32, %s3012_s27  ;;  %v2585_v35 = vpop.f32.mrb[3].mxu1  ;;  %v2407_v38 = vmul.f32 -1.442695, %v206_v37 }
 0x39a   :  { %2968 = vpow2.f32 %v2407_v38 }
 0x3a4   :  { %v2969_v39 = vpop.eup %2968 }
 0x3a5   :  { %v210_v40 = vadd.f32 1.0, %v2969_v39 }
 0x3a7   :  { %2970 = vrcp.f32 %v210_v40 }
 0x3b1   :  { %v2971_v41 = vpop.eup %2970 }
 0x3b2   :  { %v225_v47 = vsub.f32 1.0, %v2971_v41  ;;  %v231_v49 = vmul.f32 %v2971_v41, %v3097_v28 }
 0x40a   :  { %v216_v42 = vpop.permute.xlu0 %215 }
 0x40b   :  { %v218_v43 = vmul.f32 %v2971_v41, %v216_v42 }
 0x40d   :  { %220 = vrot.lane.b32.xlu1 %v218_v43, %s3012_s27 }
 0x47f   :  { %v221_v44 = vpop.permute.xlu1 %220 }
 0x480   :  { %v223_v45 = vadd.f32 %v2405_v36, %v221_v44 }
 0x482   :  { %2972 = vtanh.f32 %v223_v45 }
 0x48c   :  { %v2973_v46 = vpop.eup %2972 }
 0x48d   :  { %227 = vrot.lane.b32.xlu0 %v2973_v46, %s3014_s29  ;;  %v2414_v46 = vld [vmem:[%s3645_s0 + $0x20] sm:$0xff] }
 0x4ff   :  { %v228_v48 = vpop.permute.xlu0 %227 }
 0x500   :  { %v230_v50 = vmul.f32 %v228_v48, %v225_v47 }
 0x502   :  { %v3117_v51 = vadd.f32 %v231_v49, %v230_v50 }
 0x504   :  { %v246_v52 = vpack.c.bf16 %v3117_v51, %v3117_v51 }
 0x506   :  { %248 = vrot.lane.b32.xlu1 %v246_v52, %s3014_s29 }
 0x578   :  { %v249_v53 = vpop.permute.xlu1 %248 }
 0x579   :  { %2591 = vmatmul.mubr.msk.bf16.vlgmr.msra.gmra.mrb[4].mxu0 %vm41_vm0, %v249_v53 }
 0x57a   :  { %2603 = vmatpush3.bf16.msra.mxu0 %v3055_v1  ;;  %2606 = vmatprep.mubr.msk.bf16.mxu0 %vm3011_vm1, %v3010_v0 }
 0x57b   :  { %2604 = vmatprep.subr.bf16.mxu0 %v3010_v0 }
 0x57e   :  { %2605 = vmatpush3.bf16.msra.mxu0 %v3068_v2 }
 0x57f   :  { %2618 = vmatprep.subr.bf16.mxu0 %v3010_v0 }
 0x64c   :  { %v287_v54 = vpop.f32.mrb[4].mxu0 }
 0x64d   :  { %v300_v55 = vadd.f32 %v287_v54, %v3088_v6  ;;  %v2592_v56 = vpop.f32.mrb[5].mxu0  ;;  %v293_v60 = vadd.f32 %v2408_v59, %v287_v54 }
 0x64e   :  { %v290_v57 = vpop.f32.mrb[6].mxu0 }
 0x64f   :  { %302 = vrot.lane.b32.xlu0 %v300_v55, %s3012_s27  ;;  %v2593_v58 = vpop.f32.mrb[7].mxu0  ;;  %v2410_v61 = vmul.f32 -1.442695, %v293_v60 }
 0x651   :  { %2974 = vpow2.f32 %v2410_v61 }
 0x65b   :  { %v2975_v62 = vpop.eup %2974 }
 0x65c   :  { %v297_v63 = vadd.f32 1.0, %v2975_v62 }
 0x65e   :  { %2976 = vrcp.f32 %v297_v63 }
 0x668   :  { %v2977_v3 = vpop.eup %2976 }
 0x669   :  { %v312_v10 = vsub.f32 1.0, %v2977_v3  ;;  %v318_v12 = vmul.f32 %v2977_v3, %v3117_v51 }
 0x6c1   :  { %v303_v4 = vpop.permute.xlu0 %302 }
 0x6c2   :  { %v305_v5 = vmul.f32 %v2977_v3, %v303_v4 }
 0x6c4   :  { %307 = vrot.lane.b32.xlu1 %v305_v5, %s3012_s27 }
 0x736   :  { %v308_v7 = vpop.permute.xlu1 %307 }
 0x737   :  { %v310_v8 = vadd.f32 %v2408_v59, %v308_v7 }
 0x739   :  { %2978 = vtanh.f32 %v310_v8 }
 0x743   :  { %v2979_v9 = vpop.eup %2978 }
 0x744   :  { %314 = vrot.lane.b32.xlu0 %v2979_v9, %s3014_s29 }
 0x7b6   :  { %v315_v11 = vpop.permute.xlu0 %314 }
 0x7b7   :  { %v317_v13 = vmul.f32 %v315_v11, %v312_v10  ;;  %v2417_v10 = vld [vmem:[%s3645_s0 + $0x28] sm:$0xff] }
 0x7b9   :  { %v3137_v14 = vadd.f32 %v318_v12, %v317_v13 }
 0x7bb   :  { %v333_v15 = vpack.c.bf16 %v3137_v14, %v3137_v14 }
 0x7bd   :  { %335 = vrot.lane.b32.xlu1 %v333_v15, %s3014_s29 }
 0x82f   :  { %v336_v16 = vpop.permute.xlu1 %335 }
 0x830   :  { %2599 = vmatmul.mubr.msk.bf16.vlgmr.msra.gmra.mrb[4].mxu1 %vm41_vm0, %v336_v16 }
 0x831   :  { %2611 = vmatpush3.bf16.msra.mxu1 %v3055_v1  ;;  %2614 = vmatprep.mubr.msk.bf16.mxu1 %vm3011_vm1, %v3010_v0 }
 0x832   :  { %2612 = vmatprep.subr.bf16.mxu1 %v3010_v0 }
 0x835   :  { %2613 = vmatpush3.bf16.msra.mxu1 %v3068_v2 }
 0x836   :  { %2626 = vmatprep.subr.bf16.mxu1 %v3010_v0 }
 0x903   :  { %v374_v17 = vpop.f32.mrb[4].mxu1 }
 0x904   :  { %v387_v18 = vadd.f32 %v374_v17, %v3088_v6  ;;  %v2600_v19 = vpop.f32.mrb[5].mxu1  ;;  %v380_v23 = vadd.f32 %v2411_v22, %v374_v17 }
 0x905   :  { %v377_v20 = vpop.f32.mrb[6].mxu1 }
 0x906   :  { %389 = vrot.lane.b32.xlu0 %v387_v18, %s3012_s27  ;;  %v2601_v21 = vpop.f32.mrb[7].mxu1  ;;  %v2413_v24 = vmul.f32 -1.442695, %v380_v23 }
 0x908   :  { %2980 = vpow2.f32 %v2413_v24 }
 0x912   :  { %v2981_v25 = vpop.eup %2980 }
 0x913   :  { %v384_v26 = vadd.f32 1.0, %v2981_v25 }
 0x915   :  { %2982 = vrcp.f32 %v384_v26 }
 0x91f   :  { %v2983_v27 = vpop.eup %2982 }
 0x920   :  { %v399_v34 = vsub.f32 1.0, %v2983_v27  ;;  %v405_v36 = vmul.f32 %v2983_v27, %v3137_v14 }
 0x978   :  { %v390_v29 = vpop.permute.xlu0 %389 }
 0x979   :  { %v392_v30 = vmul.f32 %v2983_v27, %v390_v29 }
 0x97b   :  { %394 = vrot.lane.b32.xlu1 %v392_v30, %s3012_s27 }
 0x9ed   :  { %v395_v31 = vpop.permute.xlu1 %394 }
 0x9ee   :  { %v397_v32 = vadd.f32 %v2411_v22, %v395_v31 }
 0x9f0   :  { %2984 = vtanh.f32 %v397_v32  ;;  %v2420_v32 = vld [vmem:[%s3645_s0 + $0x30] sm:$0xff] }
 0x9fa   :  { %v2985_v33 = vpop.eup %2984 }
 0x9fb   :  { %401 = vrot.lane.b32.xlu0 %v2985_v33, %s3014_s29 }
 0xa6d   :  { %v402_v35 = vpop.permute.xlu0 %401 }
 0xa6e   :  { %v404_v37 = vmul.f32 %v402_v35, %v399_v34 }
 0xa70   :  { %v3157_v38 = vadd.f32 %v405_v36, %v404_v37 }
 0xa72   :  { %v420_v39 = vpack.c.bf16 %v3157_v38, %v3157_v38 }
 0xa74   :  { %422 = vrot.lane.b32.xlu1 %v420_v39, %s3014_s29 }
 0xae6   :  { %v423_v40 = vpop.permute.xlu1 %422 }
 0xae7   :  { %2607 = vmatmul.mubr.msk.bf16.vlgmr.msra.gmra.mrb[8].mxu0 %vm41_vm0, %v423_v40 }
 0xae8   :  { %2619 = vmatpush3.bf16.msra.mxu0 %v3055_v1  ;;  %2622 = vmatprep.mubr.msk.bf16.mxu0 %vm3011_vm1, %v3010_v0 }
 0xae9   :  { %2620 = vmatprep.subr.bf16.mxu0 %v3010_v0 }
 0xaec   :  { %2621 = vmatpush3.bf16.msra.mxu0 %v3068_v2 }
 0xbba   :  { %v461_v41 = vpop.f32.mrb[8].mxu0 }
 0xbbb   :  { %v474_v42 = vadd.f32 %v461_v41, %v3088_v6  ;;  %v2608_v43 = vpop.f32.mrb[9].mxu0  ;;  %v467_v47 = vadd.f32 %v2414_v46, %v461_v41 }
 0xbbc   :  { %v464_v44 = vpop.f32.mrb[10].mxu0 }
 0xbbd   :  { %476 = vrot.lane.b32.xlu0 %v474_v42, %s3012_s27  ;;  %v2609_v45 = vpop.f32.mrb[11].mxu0  ;;  %v2416_v48 = vmul.f32 -1.442695, %v467_v47 }
 0xbbf   :  { %2986 = vpow2.f32 %v2416_v48 }
 0xbc9   :  { %v2987_v49 = vpop.eup %2986 }
 0xbca   :  { %v471_v50 = vadd.f32 1.0, %v2987_v49 }
 0xbcc   :  { %2988 = vrcp.f32 %v471_v50 }
 0xbd6   :  { %v2989_v52 = vpop.eup %2988 }
 0xbd7   :  { %v486_v58 = vsub.f32 1.0, %v2989_v52  ;;  %v492_v60 = vmul.f32 %v2989_v52, %v3157_v38 }
 0xc2f   :  { %v477_v53 = vpop.permute.xlu0 %476 }
 0xc30   :  { %v479_v54 = vmul.f32 %v2989_v52, %v477_v53 }
 0xc32   :  { %481 = vrot.lane.b32.xlu1 %v479_v54, %s3012_s27 }
 0xca4   :  { %v482_v55 = vpop.permute.xlu1 %481 }
 0xca5   :  { %v484_v56 = vadd.f32 %v2414_v46, %v482_v55 }
 0xca7   :  { %2990 = vtanh.f32 %v484_v56 }
 0xcb1   :  { %v2991_v57 = vpop.eup %2990 }
 0xcb2   :  { %488 = vrot.lane.b32.xlu0 %v2991_v57, %s3014_s29  ;;  %v2423_v57 = vld [vmem:[%s3645_s0 + $0x38] sm:$0xff] }
 0xd24   :  { %v489_v59 = vpop.permute.xlu0 %488 }
 0xd25   :  { %v491_v61 = vmul.f32 %v489_v59, %v486_v58 }
 0xd27   :  { %v3176_v62 = vadd.f32 %v492_v60, %v491_v61 }
 0xd29   :  { %v507_v63 = vpack.c.bf16 %v3176_v62, %v3176_v62 }
 0xd2b   :  { %509 = vrot.lane.b32.xlu1 %v507_v63, %s3014_s29 }
 0xd9d   :  { %v510_v3 = vpop.permute.xlu1 %509 }
 0xd9e   :  { %2615 = vmatmul.mubr.msk.bf16.vlgmr.msra.gmra.mrb[8].mxu1 %vm41_vm0, %v510_v3 }
 0xd9f   :  { %2627 = vmatpush3.bf16.msra.mxu1 %v3055_v1  ;;  %2630 = vmatprep.mubr.msk.bf16.mxu1 %vm3011_vm1, %v3010_v0 }
 0xda0   :  { %2628 = vmatprep.subr.bf16.mxu1 %v3010_v0 }
 0xda3   :  { %2629 = vmatpush3.bf16.msra.mxu1 %v3068_v2 }
 0xe71   :  { %v548_v4 = vpop.f32.mrb[8].mxu1 }
 0xe72   :  { %v561_v5 = vadd.f32 %v548_v4, %v3088_v6  ;;  %v2616_v7 = vpop.f32.mrb[9].mxu1  ;;  %v554_v1 = vadd.f32 %v2417_v10, %v548_v4  ;;  %v3229_v4 = vld [vmem:[%s3646_s3] sm:$0xff] }
 0xe73   :  { %v551_v8 = vpop.f32.mrb[10].mxu1  ;;  %v801_v7 = vand.u32 4294901760, %v3229_v4 }
 0xe74   :  { %563 = vrot.lane.b32.xlu0 %v561_v5, %s3012_s27  ;;  %v2617_v9 = vpop.f32.mrb[11].mxu1  ;;  %v2419_v11 = vmul.f32 -1.442695, %v554_v1  ;;  %v3234_v5 = vld [vmem:[%s3646_s3 + $0x8] sm:$0xff]  ;;  %s3015_s3 = smov 80  }
 0xe75   :  { %v804_v8 = vand.u32 4294901760, %v3234_v5 }
 0xe76   :  { %2992 = vpow2.f32 %v2419_v11 }
 0xe77   :  { %v3244_v9 = vpack.c.bf16 %v804_v8, %v801_v7 }
 0xe79   :  { %2827 = vmatprep.subr.bf16.mxu0 %v3244_v9 }
 0xe80   :  { %v2993_v12 = vpop.eup %2992 }
 0xe81   :  { %v558_v13 = vadd.f32 1.0, %v2993_v12 }
 0xe83   :  { %2994 = vrcp.f32 %v558_v13 }
 0xe8d   :  { %v2995_v0 = vpop.eup %2994 }
 0xe8e   :  { %v573_v19 = vsub.f32 1.0, %v2995_v0  ;;  %v579_v21 = vmul.f32 %v2995_v0, %v3176_v62 }
 0xee6   :  { %v564_v2 = vpop.permute.xlu0 %563 }
 0xee7   :  { %v566_v15 = vmul.f32 %v2995_v0, %v564_v2 }
 0xee9   :  { %568 = vrot.lane.b32.xlu1 %v566_v15, %s3012_s27 }
 0xf5b   :  { %v569_v16 = vpop.permute.xlu1 %568 }
 0xf5c   :  { %v571_v17 = vadd.f32 %v2417_v10, %v569_v16 }
 0xf5e   :  { %2996 = vtanh.f32 %v571_v17 }
 0xf68   :  { %v2997_v18 = vpop.eup %2996 }
 0xf69   :  { %575 = vrot.lane.b32.xlu0 %v2997_v18, %s3014_s29 }
 0xfdb   :  { %v576_v20 = vpop.permute.xlu0 %575 }
 0xfdc   :  { %v578_v22 = vmul.f32 %v576_v20, %v573_v19 }
 0xfde   :  { %v3195_v23 = vadd.f32 %v579_v21, %v578_v22 }
 0xfe0   :  { %v594_v24 = vpack.c.bf16 %v3195_v23, %v3195_v23 }
 0xfe2   :  { %596 = vrot.lane.b32.xlu1 %v594_v24, %s3014_s29 }
0x1054   :  { %v597_v25 = vpop.permute.xlu1 %596 }
0x1055   :  { %2623 = vmatmul.mubr.msk.bf16.vlgmr.msra.gmra.mrb[12].mxu0 %vm41_vm0, %v597_v25 }
0x1056   :  { %2829 = vmatpush3.bf16.msra.mxu0 %v3244_v9 }
0x1128   :  { %v635_v26 = vpop.f32.mrb[12].mxu0 }
0x1129   :  { %v648_v27 = vadd.f32 %v635_v26, %v3088_v6  ;;  %v2624_v29 = vpop.f32.mrb[13].mxu0  ;;  %v641_v33 = vadd.f32 %v2420_v32, %v635_v26 }
0x112a   :  { %v638_v30 = vpop.f32.mrb[14].mxu0 }
0x112b   :  { %650 = vrot.lane.b32.xlu0 %v648_v27, %s3012_s27  ;;  %v2625_v31 = vpop.f32.mrb[15].mxu0  ;;  %v2422_v34 = vmul.f32 -1.442695, %v641_v33 }
0x112d   :  { %2998 = vpow2.f32 %v2422_v34 }
0x1137   :  { %v2999_v35 = vpop.eup %2998 }
0x1138   :  { %v645_v36 = vadd.f32 1.0, %v2999_v35 }
0x113a   :  { %3000 = vrcp.f32 %v645_v36 }
0x1144   :  { %v3001_v37 = vpop.eup %3000 }
0x1145   :  { %v660_v44 = vsub.f32 1.0, %v3001_v37  ;;  %v666_v46 = vmul.f32 %v3001_v37, %v3195_v23 }
0x119d   :  { %v651_v39 = vpop.permute.xlu0 %650 }
0x119e   :  { %v653_v40 = vmul.f32 %v3001_v37, %v651_v39 }
0x11a0   :  { %655 = vrot.lane.b32.xlu1 %v653_v40, %s3012_s27 }
0x1212   :  { %v656_v41 = vpop.permute.xlu1 %655 }
0x1213   :  { %v658_v42 = vadd.f32 %v2420_v32, %v656_v41 }
0x1215   :  { %3002 = vtanh.f32 %v658_v42 }
0x121f   :  { %v3003_v43 = vpop.eup %3002 }
0x1220   :  { %662 = vrot.lane.b32.xlu0 %v3003_v43, %s3014_s29 }
0x1292   :  { %v663_v45 = vpop.permute.xlu0 %662 }
0x1293   :  { %v665_v47 = vmul.f32 %v663_v45, %v660_v44 }
0x1295   :  { %v3209_v48 = vadd.f32 %v666_v46, %v665_v47 }
0x1297   :  { %v681_v49 = vpack.c.bf16 %v3209_v48, %v3209_v48 }
0x1299   :  { %683 = vrot.lane.b32.xlu1 %v681_v49, %s3014_s29 }
0x130b   :  { %v684_v50 = vpop.permute.xlu1 %683 }
0x130c   :  { %2631 = vmatmul.mubr.msk.bf16.vlgmr.msra.gmra.mrb[12].mxu1 %vm41_vm0, %v684_v50 }
0x13df   :  { %v722_v52 = vpop.f32.mrb[12].mxu1 }
0x13e0   :  { %v735_v53 = vadd.f32 %v722_v52, %v3088_v6  ;;  %v2632_v54 = vpop.f32.mrb[13].mxu1  ;;  %v728_v58 = vadd.f32 %v2423_v57, %v722_v52 }
0x13e1   :  { %v725_v55 = vpop.f32.mrb[14].mxu1  ;;  %v1577_v54 = vld [vmem:[%s3647_s4 + $0x8] sm:$0xff] }
0x13e2   :  { %737 = vrot.lane.b32.xlu0 %v735_v53, %s3012_s27  ;;  %v2633_v56 = vpop.f32.mrb[15].mxu1  ;;  %v2425_v59 = vmul.f32 -1.442695, %v728_v58  ;;  %v1576_v53 = vld [vmem:[%s3647_s4] sm:$0xff] }
0x13e3   :  { %v1603_v56 = vand.u32 4294901760, %v1576_v53 }
0x13e4   :  { %3004 = vpow2.f32 %v2425_v59 }
0x13ee   :  { %v3005_v60 = vpop.eup %3004 }
0x13ef   :  { %v732_v61 = vadd.f32 1.0, %v3005_v60 }
0x13f1   :  { %3006 = vrcp.f32 %v732_v61  ;;  %v949_v61 = vsub.f32 %v3229_v4, %v801_v7 }
0x13fb   :  { %v3220_v63 = vpop.eup %3006 }
0x13fc   :  { %v747_v46 = vsub.f32 1.0, %v3220_v63  ;;  %v753_v49 = vmul.f32 %v3220_v63, %v3209_v48 }
0x1454   :  { %v738_v3 = vpop.permute.xlu0 %737 }
0x1455   :  { %v740_v6 = vmul.f32 %v3220_v63, %v738_v3  ;;  %v956_v63 = vsub.f32 %v3234_v5, %v804_v8  ;;  %v1751_v3 = vsub.f32 %v1576_v53, %v1603_v56 }
0x1457   :  { %742 = vrot.lane.b32.xlu1 %v740_v6, %s3012_s27 }
0x145b   :  { %147 = vrot.lane.b32.xlu1 %v3097_v28, %s3014_s29 }
0x145f   :  { %234 = vrot.lane.b32.xlu1 %v3117_v51, %s3014_s29 }
0x1463   :  { %321 = vrot.lane.b32.xlu1 %v3137_v14, %s3014_s29 }
0x1467   :  { %408 = vrot.lane.b32.xlu1 %v3157_v38, %s3014_s29 }
0x146b   :  { %413 = vrot.lane.b32.xlu1 %v3157_v38, %s3015_s3 }
0x146f   :  { %326 = vrot.lane.b32.xlu1 %v3137_v14, %s3015_s3 }
0x1473   :  { %239 = vrot.lane.b32.xlu1 %v3117_v51, %s3015_s3 }
0x1477   :  { %152 = vrot.lane.b32.xlu1 %v3097_v28, %s3015_s3 }
0x14c9   :  { %v743_v10 = vpop.permute.xlu1 %742 }
0x14ca   :  { %v745_v1 = vadd.f32 %v2423_v57, %v743_v10  ;;  %v1606_v57 = vand.u32 4294901760, %v1577_v54  ;;  %v950_v10 = vand.u32 4294901760, %v949_v61 }
0x14cc   :  { %3008 = vtanh.f32 %v745_v1  ;;  %v3326_v58 = vpack.c.bf16 %v1606_v57, %v1603_v56  ;;  %v1758_v6 = vsub.f32 %v1577_v54, %v1606_v57  ;;  %v1752_v1 = vand.u32 4294901760, %v1751_v3 }
0x14cd   :  { %v148_v11 = vpop.permute.xlu1 %147 }
0x14ce   :  { %151 = vst.msk [vmem:[#allocation3] sm:$0xff] %vm150_vm2, %v148_v11  ;;  %2851 = vmatprep.subr.bf16.mxu1 %v3326_v58  ;;  %v1759_v11 = vand.u32 4294901760, %v1758_v6 }
0x14cf   :  { %2853 = vmatpush3.bf16.msra.mxu1 %v3326_v58 }
0x14d1   :  { %v235_v12 = vpop.permute.xlu1 %234 }
0x14d2   :  { %238 = vst.msk [vmem:[#allocation3 + $0x8] sm:$0xff] %vm150_vm2, %v235_v12  ;;  %v951_v12 = vsub.f32 %v949_v61, %v950_v10 }
0x14d5   :  { %v322_v38 = vpop.permute.xlu1 %321  ;;  %v766_v13 = vld [vmem:[#allocation3] sm:$0xff] }
0x14d6   :  { %v3009_v0 = vpop.eup %3008  ;;  %325 = vst.msk [vmem:[#allocation3 + $0x10] sm:$0xff] %vm150_vm2, %v322_v38  ;;  %v777_v51 = vsel %vm150_vm2, %v766_v13, 0  ;;  %v1760_v13 = vsub.f32 %v1758_v6, %v1759_v11 }
0x14d7   :  { %749 = vrot.lane.b32.xlu0 %v3009_v0, %s3014_s29  ;;  %v3265_v28 = vand.u32 4294901760, %v777_v51  ;;  %v952_v0 = vand.u32 4294901760, %v951_v12 }
0x14d8   :  { %v1761_v7 = vand.u32 4294901760, %v1760_v13 }
0x14d9   :  { %v409_v14 = vpop.permute.xlu1 %408  ;;  %v3268_v2 = vsub.f32 %v777_v51, %v3265_v28  ;;  %v767_v15 = vld [vmem:[#allocation3 + $0x8] sm:$0xff] }
0x14da   :  { %412 = vst.msk [vmem:[#allocation3 + $0x18] sm:$0xff] %vm150_vm2, %v409_v14  ;;  %v780_v16 = vsel %vm150_vm2, %v767_v15, 0  ;;  %v3348_v14 = vpack.c.bf16 %v956_v63, %v949_v61 }
0x14db   :  { %674 = vrot.lane.b32.xlu0 %v3209_v48, %s3015_s3  ;;  %v869_v17 = vand.u32 4294901760, %v3268_v2  ;;  %v3275_v18 = vand.u32 4294901760, %v780_v16 }
0x14dd   :  { %v414_v19 = vpop.permute.xlu1 %413  ;;  %v870_v20 = vsub.f32 %v3268_v2, %v869_v17  ;;  %v3281_v21 = vsub.f32 %v780_v16, %v3275_v18  ;;  %v768_v22 = vld [vmem:[#allocation3 + $0x10] sm:$0xff]  ;;  %v3355_v16 = vpack.c.bf16 %v1759_v11, %v1752_v1 }
0x14de   :  { %417 = vst.msk [vmem:[#allocation4 + $0x20] sm:$0xff] %vm150_vm2, %v414_v19  ;;  %v783_v24 = vsel %vm150_vm2, %v768_v22, 0 }
0x14df   :  { %587 = vrot.lane.b32.xlu0 %v3195_v23, %s3015_s3  ;;  %v871_v25 = vand.u32 4294901760, %v870_v20  ;;  %v879_v26 = vand.u32 4294901760, %v3281_v21  ;;  %v3288_v27 = vand.u32 4294901760, %v783_v24 }
0x14e1   :  { %2638 = vmatprep.mubr.f32.mxu0 %v871_v25  ;;  %v327_v29 = vpop.permute.xlu1 %326  ;;  %v880_v30 = vsub.f32 %v3281_v21, %v879_v26  ;;  %v3294_v31 = vsub.f32 %v783_v24, %v3288_v27  ;;  %v769_v32 = vld [vmem:[#allocation3 + $0x18] sm:$0xff] }
0x14e2   :  { %330 = vst.msk [vmem:[#allocation4 + $0x28] sm:$0xff] %vm150_vm2, %v327_v29  ;;  %v786_v33 = vsel %vm150_vm2, %v769_v32, 0 }
0x14e3   :  { %500 = vrot.lane.b32.xlu0 %v3176_v62, %s3015_s3  ;;  %v881_v34 = vand.u32 4294901760, %v880_v30  ;;  %v889_v35 = vand.u32 4294901760, %v3294_v31  ;;  %v3301_v36 = vand.u32 4294901760, %v786_v33 }
0x14e5   :  { %2639 = vmatmul.mubr.f32.vlgmr.msra.gmra.mrb[16].mxu0 %v881_v34  ;;  %v240_v37 = vpop.permute.xlu1 %239  ;;  %v890_v39 = vsub.f32 %v3294_v31, %v889_v35  ;;  %v3307_v40 = vsub.f32 %v786_v33, %v3301_v36  ;;  %v1572_v25 = vld [vmem:[#allocation4 + $0x20] sm:$0xff] }
0x14e6   :  { %243 = vst.msk [vmem:[#allocation4 + $0x30] sm:$0xff] %vm150_vm2, %v240_v37  ;;  %v1591_v33 = vsel %vm150_vm2, %v1572_v25, 0 }
0x14e7   :  { %v891_v41 = vand.u32 4294901760, %v890_v39  ;;  %v899_v42 = vand.u32 4294901760, %v3307_v40 }
0x14e9   :  { %2641 = vmatprep.mubr.f32.mxu0 %v891_v41  ;;  %v153_v43 = vpop.permute.xlu1 %152  ;;  %v900_v44 = vsub.f32 %v3307_v40, %v899_v42  ;;  %v1573_v41 = vld [vmem:[#allocation4 + $0x28] sm:$0xff] }
0x14ea   :  { %156 = vst.msk [vmem:[#allocation4 + $0x38] sm:$0xff] %vm150_vm2, %v153_v43  ;;  %v3367_v43 = vand.u32 4294901760, %v1591_v33 }
0x14eb   :  { %v901_v45 = vand.u32 4294901760, %v900_v44 }
0x14ec   :  { %v3384_v57 = vsub.f32 %v1591_v33, %v3367_v43 }
0x14ed   :  { %2642 = vmatmul.mubr.f32.gmra.mrb[18].mxu0 %v901_v45  ;;  %v1574_v44 = vld [vmem:[#allocation4 + $0x30] sm:$0xff] }
0x14ee   :  { %v1597_v54 = vsel %vm150_vm2, %v1574_v44, 0 }
0x1549   :  { %v750_v47 = vpop.permute.xlu0 %749 }
0x154a   :  { %v752_v50 = vmul.f32 %v750_v47, %v747_v46 }
0x154c   :  { %v754_v52 = vadd.f32 %v753_v49, %v752_v50 }
0x154d   :  { %v675_v55 = vpop.permute.xlu0 %674 }
0x154e   :  { %678 = vst.msk [vmem:[#allocation4 + $0x8] sm:$0xff] %vm150_vm2, %v675_v55  ;;  %761 = vrot.lane.b32.xlu0 %v754_v52, %s3015_s3  ;;  %v1575_v55 = vld [vmem:[#allocation4 + $0x38] sm:$0xff] }
0x1551   :  { %v588_v59 = vpop.permute.xlu0 %587 }
0x1552   :  { %591 = vst.msk [vmem:[#allocation4 + $0x10] sm:$0xff] %vm150_vm2, %v588_v59  ;;  %495 = vrot.lane.b32.xlu0 %v3176_v62, %s3014_s29  ;;  %v957_v62 = vand.u32 4294901760, %v956_v63 }
0x1554   :  { %v958_v38 = vsub.f32 %v956_v63, %v957_v62  ;;  %v3353_v15 = vpack.c.bf16 %v957_v62, %v950_v10  ;;  %v3396_v62 = vand.u32 4294901760, %v1597_v54 }
0x1555   :  { %v501_v60 = vpop.permute.xlu0 %500  ;;  %v1569_v19 = vld [vmem:[#allocation4 + $0x8] sm:$0xff] }
0x1556   :  { %504 = vst.msk [vmem:[#allocation4 + $0x18] sm:$0xff] %vm150_vm2, %v501_v60  ;;  %582 = vrot.lane.b32.xlu0 %v3195_v23, %s3014_s29  ;;  %v1753_v23 = vsub.f32 %v1751_v3, %v1752_v1  ;;  %v959_v51 = vand.u32 4294901760, %v958_v38  ;;  %v1582_v24 = vsel %vm150_vm2, %v1569_v19, 0  ;;  %v1600_v1 = vsel %vm150_vm2, %v1575_v55, 0 }
0x1557   :  { %v3360_v32 = vand.u32 4294901760, %v1582_v24 }
0x1558   :  { %v1754_v4 = vand.u32 4294901760, %v1753_v23  ;;  %v2830_v5 = vpack.c.bf16 %v959_v51, %v952_v0  ;;  %v1711_v23 = vand.u32 4294901760, %v3384_v57 }
0x1559   :  { %v1570_v20 = vld [vmem:[#allocation4 + $0x10] sm:$0xff]  ;;  %v3370_v45 = vsub.f32 %v1582_v24, %v3360_v32  ;;  %v3424_v24 = vsub.f32 %v1597_v54, %v3396_v62 }
0x155a   :  { %669 = vrot.lane.b32.xlu0 %v3209_v48, %s3014_s29  ;;  %v3345_v8 = vpack.c.bf16 %v1761_v7, %v1754_v4  ;;  %2831 = vmatprep.subr.bf16.mxu0 %v2830_v5  ;;  %v3350_v48 = vpack.c.bf16 %v1758_v6, %v1751_v3  ;;  %v1585_v29 = vsel %vm150_vm2, %v1570_v20, 0  ;;  %v3412_v4 = vand.u32 4294901760, %v1600_v1 }
0x155b   :  { %2833 = vmatpush3.bf16.msra.mxu0 %v2830_v5  ;;  %v3363_v37 = vand.u32 4294901760, %v1585_v29  ;;  %v1681_v59 = vand.u32 4294901760, %v3370_v45  ;;  %v1712_v33 = vsub.f32 %v3384_v57, %v1711_v23  ;;  %v1731_v54 = vand.u32 4294901760, %v3424_v24 }
0x155c   :  { %2855 = vmatprep.subr.bf16.mxu1 %v3345_v8  ;;  %2835 = vmatprep.subr.bf16.mxu0 %v3348_v14 }
0x155d   :  { %v1571_v30 = vld [vmem:[#allocation4 + $0x18] sm:$0xff]  ;;  %v3375_v50 = vsub.f32 %v1585_v29, %v3363_v37  ;;  %v1682_v13 = vsub.f32 %v3370_v45, %v1681_v59 }
0x155e   :  { %756 = vrot.lane.b32.xlu0 %v754_v52, %s3014_s29  ;;  %v1588_v39 = vsel %vm150_vm2, %v1571_v30, 0  ;;  %v1594_v52 = vsel %vm150_vm2, %v1573_v41, 0 }
0x155f   :  { %v3372_v46 = vand.u32 4294901760, %v1588_v39  ;;  %v3390_v61 = vand.u32 4294901760, %v1594_v52  ;;  %v1691_v6 = vand.u32 4294901760, %v3375_v50 }
0x1561   :  { %v3388_v60 = vsub.f32 %v1588_v39, %v3372_v46  ;;  %v3410_v51 = vsub.f32 %v1594_v52, %v3390_v61  ;;  %v1692_v19 = vsub.f32 %v3375_v50, %v1691_v6  ;;  %v1683_v39 = vand.u32 4294901760, %v1682_v13 }
0x1563   :  { %v1701_v0 = vand.u32 4294901760, %v3388_v60  ;;  %v1721_v44 = vand.u32 4294901760, %v3410_v51 }
0x1565   :  { %v1702_v41 = vsub.f32 %v3388_v60, %v1701_v0 }
0x1567   :  { %v1703_v13 = vand.u32 4294901760, %v1702_v41 }
0x15c0   :  { %v762_v22 = vpop.permute.xlu0 %761 }
0x15c1   :  { %764 = vst.msk [vmem:[#allocation4] sm:$0xff] %vm150_vm2, %v762_v22 }
0x15c4   :  { %v496_v34 = vpop.permute.xlu0 %495 }
0x15c5   :  { %499 = vst.msk [vmem:[#allocation3 + $0x20] sm:$0xff] %vm150_vm2, %v496_v34 }
0x15c8   :  { %v583_v47 = vpop.permute.xlu0 %582  ;;  %v1568_v49 = vld [vmem:[#allocation4] sm:$0xff] }
0x15c9   :  { %586 = vst.msk [vmem:[#allocation3 + $0x28] sm:$0xff] %vm150_vm2, %v583_v47  ;;  %v1579_v53 = vsel %vm150_vm2, %v1568_v49, 0  ;;  %v3440_v47 = vsub.f32 %v1600_v1, %v3412_v4  ;;  %v1693_v49 = vand.u32 4294901760, %v1692_v19  ;;  %v1713_v19 = vand.u32 4294901760, %v1712_v33 }
0x15ca   :  { %v3381_v56 = vand.u32 4294901760, %v1579_v53 }
0x15cc   :  { %v670_v63 = vpop.permute.xlu0 %669  ;;  %v3393_v3 = vsub.f32 %v1579_v53, %v3381_v56  ;;  %v770_v10 = vld [vmem:[#allocation3 + $0x20] sm:$0xff] }
0x15cd   :  { %673 = vst.msk [vmem:[#allocation3 + $0x30] sm:$0xff] %vm150_vm2, %v670_v63  ;;  %v789_v11 = vsel %vm150_vm2, %v770_v10, 0 }
0x15ce   :  { %v1671_v12 = vand.u32 4294901760, %v3393_v3  ;;  %v3402_v38 = vand.u32 4294901760, %v789_v11 }
0x15d0   :  { %v757_v7 = vpop.permute.xlu0 %756  ;;  %v1672_v5 = vsub.f32 %v3393_v3, %v1671_v12  ;;  %v3421_v20 = vsub.f32 %v789_v11, %v3402_v38  ;;  %v771_v22 = vld [vmem:[#allocation3 + $0x28] sm:$0xff] }
0x15d1   :  { %760 = vst.msk [vmem:[#allocation3 + $0x38] sm:$0xff] %vm150_vm2, %v757_v7  ;;  %v792_v25 = vsel %vm150_vm2, %v771_v22, 0 }
0x15d2   :  { %765 = vst.msk [vmem:[#allocation2] sm:$0xff] %vm41_vm0, %v757_v7  ;;  %v1673_v29 = vand.u32 4294901760, %v1672_v5  ;;  %v909_v30 = vand.u32 4294901760, %v3421_v20  ;;  %v3433_v34 = vand.u32 4294901760, %v792_v25  ;;  %v1722_v7 = vsub.f32 %v3410_v51, %v1721_v44 }
0x15d3   :  { %v1741_v5 = vand.u32 4294901760, %v3440_v47 }
0x15d4   :  { %2734 = vmatprep.mubr.f32.mxu1 %v1673_v29  ;;  %v910_v52 = vsub.f32 %v3421_v20, %v909_v30  ;;  %v3446_v53 = vsub.f32 %v792_v25, %v3433_v34  ;;  %v772_v55 = vld [vmem:[#allocation3 + $0x30] sm:$0xff] }
0x15d5   :  { %2735 = vmatmul.mubr.f32.vlgmr.msra.gmra.mrb[16].mxu1 %v1683_v39  ;;  %v795_v63 = vsel %vm150_vm2, %v772_v55, 0  ;;  %v1742_v55 = vsub.f32 %v3440_v47, %v1741_v5 }
0x15d6   :  { %2737 = vmatprep.mubr.f32.mxu1 %v1693_v49  ;;  %v911_v10 = vand.u32 4294901760, %v910_v52  ;;  %2857 = vmatpush3.bf16.msra.mxu1 %v3345_v8  ;;  %v919_v1 = vand.u32 4294901760, %v3446_v53  ;;  %v3452_v11 = vand.u32 4294901760, %v795_v63  ;;  %v1732_v8 = vsub.f32 %v3424_v24, %v1731_v54 }
0x15d7   :  { %2859 = vmatprep.subr.bf16.mxu1 %v3350_v48  ;;  %v1723_v52 = vand.u32 4294901760, %v1722_v7 }
0x15d8   :  { %2644 = vmatprep.mubr.f32.mxu0 %v911_v10  ;;  %v920_v22 = vsub.f32 %v3446_v53, %v919_v1  ;;  %v3466_v25 = vsub.f32 %v795_v63, %v3452_v11  ;;  %v773_v29 = vld [vmem:[#allocation3 + $0x38] sm:$0xff]  ;;  %v1733_v10 = vand.u32 4294901760, %v1732_v8 }
0x15d9   :  { %2738 = vmatmul.mubr.f32.gmra.mrb[18].mxu1 %v1703_v13  ;;  %v798_v39 = vsel %vm150_vm2, %v773_v29, 0  ;;  %v1743_v29 = vand.u32 4294901760, %v1742_v55 }
0x15da   :  { %2740 = vmatprep.mubr.f32.mxu1 %v1713_v19  ;;  %v921_v41 = vand.u32 4294901760, %v920_v22  ;;  %v929_v49 = vand.u32 4294901760, %v3466_v25  ;;  %v3470_v33 = vand.u32 4294901760, %v798_v39 }
0x15dc   :  { %2645 = vmatmul.mubr.f32.gmra.mrb[20].mxu0 %v921_v41  ;;  %v930_v63 = vsub.f32 %v3466_v25, %v929_v49  ;;  %v3479_v13 = vsub.f32 %v798_v39, %v3470_v33 }
0x15dd   :  { %2741 = vmatmul.mubr.f32.gmra.mrb[20].mxu1 %v1723_v52 }
0x15de   :  { %2743 = vmatprep.mubr.f32.mxu1 %v1733_v10  ;;  %v931_v19 = vand.u32 4294901760, %v930_v63  ;;  %v939_v22 = vand.u32 4294901760, %v3479_v13 }
0x15e0   :  { %2647 = vmatprep.mubr.f32.mxu0 %v931_v19  ;;  %v940_v7 = vsub.f32 %v3479_v13, %v939_v22 }
0x15e1   :  { %2744 = vmatmul.mubr.f32.gmra.mrb[22].mxu1 %v1743_v29 }
0x15e2   :  { %2750 = vmatprep.mubr.f32.mxu1 %v3381_v56  ;;  %v941_v8 = vand.u32 4294901760, %v940_v7 }
0x15e4   :  { %2648 = vmatmul.mubr.f32.gmra.mrb[22].mxu0 %v941_v8 }
0x15e5   :  { %2654 = vmatprep.mubr.f32.mxu0 %v3265_v28  ;;  %2751 = vmatmul.mubr.f32.vlgmr.msra.gmra.mrb[16].mxu1 %v3360_v32 }
0x15e6   :  { %2753 = vmatprep.mubr.f32.mxu1 %v3363_v37  ;;  %2861 = vmatpush3.bf16.msra.mxu1 %v3350_v48 }
0x15e7   :  { %2863 = vmatprep.subr.bf16.mxu1 %v3326_v58 }
0x15e8   :  { %2655 = vmatmul.mubr.f32.vlgmr.msra.gmra.mrb[16].mxu0 %v3275_v18 }
0x15e9   :  { %2837 = vmatpush3.bf16.msra.mxu0 %v3348_v14  ;;  %2657 = vmatprep.mubr.f32.mxu0 %v3288_v27 }
0x15ea   :  { %2754 = vmatmul.mubr.f32.gmra.mrb[18].mxu1 %v3372_v46  ;;  %2839 = vmatprep.subr.bf16.mxu0 %v3244_v9 }
0x15eb   :  { %2756 = vmatprep.mubr.f32.mxu1 %v3367_v43 }
0x15ec   :  { %2658 = vmatmul.mubr.f32.gmra.mrb[18].mxu0 %v3301_v36 }
0x15ed   :  { %2660 = vmatprep.mubr.f32.mxu0 %v3402_v38 }
0x15ee   :  { %2757 = vmatmul.mubr.f32.gmra.mrb[20].mxu1 %v3390_v61 }
0x15ef   :  { %2759 = vmatprep.mubr.f32.mxu1 %v3396_v62 }
0x15f0   :  { %2661 = vmatmul.mubr.f32.gmra.mrb[20].mxu0 %v3433_v34 }
0x15f1   :  { %2663 = vmatprep.mubr.f32.mxu0 %v3452_v11 }
0x15f2   :  { %2760 = vmatmul.mubr.f32.gmra.mrb[22].mxu1 %v3412_v4 }
0x15f3   :  { %2766 = vmatprep.mubr.f32.mxu1 %v3393_v3 }
0x15f4   :  { %2664 = vmatmul.mubr.f32.gmra.mrb[22].mxu0 %v3470_v33 }
0x15f5   :  { %2670 = vmatprep.mubr.f32.mxu0 %v3268_v2 }
0x15f6   :  { %2767 = vmatmul.mubr.f32.vlgmr.msra.gmra.mrb[16].mxu1 %v3370_v45 }
0x15f7   :  { %2769 = vmatprep.mubr.f32.mxu1 %v3375_v50  ;;  %2865 = vmatpush3.bf16.msra.mxu1 %v3326_v58 }
0x15f8   :  { %2671 = vmatmul.mubr.f32.vlgmr.msra.gmra.mrb[16].mxu0 %v3281_v21  ;;  %2867 = vmatprep.subr.bf16.mxu1 %v3355_v16 }
0x15f9   :  { %2841 = vmatpush3.bf16.msra.mxu0 %v3244_v9  ;;  %2673 = vmatprep.mubr.f32.mxu0 %v3294_v31 }
0x15fa   :  { %2770 = vmatmul.mubr.f32.gmra.mrb[18].mxu1 %v3388_v60  ;;  %2843 = vmatprep.subr.bf16.mxu0 %v3353_v15 }
0x15fb   :  { %2772 = vmatprep.mubr.f32.mxu1 %v3384_v57 }
0x15fc   :  { %2674 = vmatmul.mubr.f32.gmra.mrb[18].mxu0 %v3307_v40 }
0x15fd   :  { %2676 = vmatprep.mubr.f32.mxu0 %v3421_v20 }
0x15fe   :  { %2773 = vmatmul.mubr.f32.gmra.mrb[20].mxu1 %v3410_v51 }
0x15ff   :  { %2775 = vmatprep.mubr.f32.mxu1 %v3424_v24 }
0x1600   :  { %2677 = vmatmul.mubr.f32.gmra.mrb[20].mxu0 %v3446_v53 }
0x1601   :  { %2679 = vmatprep.mubr.f32.mxu0 %v3466_v25 }
0x1602   :  { %2776 = vmatmul.mubr.f32.gmra.mrb[22].mxu1 %v3440_v47 }
0x1603   :  { %2782 = vmatprep.mubr.f32.mxu1 %v1671_v12 }
0x1604   :  { %2680 = vmatmul.mubr.f32.gmra.mrb[22].mxu0 %v3479_v13 }
0x1605   :  { %2686 = vmatprep.mubr.f32.mxu0 %v869_v17 }
0x1606   :  { %2783 = vmatmul.mubr.f32.vlgmr.msra.gmra.mrb[16].mxu1 %v1681_v59 }
0x1607   :  { %2785 = vmatprep.mubr.f32.mxu1 %v1691_v6  ;;  %2869 = vmatpush3.bf16.msra.mxu1 %v3355_v16 }
0x1608   :  { %2687 = vmatmul.mubr.f32.vlgmr.msra.gmra.mrb[16].mxu0 %v879_v26  ;;  %2871 = vmatprep.subr.bf16.mxu1 %v3326_v58 }
0x1609   :  { %2845 = vmatpush3.bf16.msra.mxu0 %v3353_v15  ;;  %2689 = vmatprep.mubr.f32.mxu0 %v889_v35 }
0x160a   :  { %2786 = vmatmul.mubr.f32.gmra.mrb[18].mxu1 %v1701_v0  ;;  %2847 = vmatprep.subr.bf16.mxu0 %v3244_v9 }
0x160b   :  { %2788 = vmatprep.mubr.f32.mxu1 %v1711_v23 }
0x160c   :  { %2690 = vmatmul.mubr.f32.gmra.mrb[18].mxu0 %v899_v42 }
0x160d   :  { %2692 = vmatprep.mubr.f32.mxu0 %v909_v30 }
0x160e   :  { %2789 = vmatmul.mubr.f32.gmra.mrb[20].mxu1 %v1721_v44 }
0x160f   :  { %2791 = vmatprep.mubr.f32.mxu1 %v1731_v54 }
0x1610   :  { %2693 = vmatmul.mubr.f32.gmra.mrb[20].mxu0 %v919_v1 }
0x1611   :  { %2695 = vmatprep.mubr.f32.mxu0 %v929_v49 }
0x1612   :  { %2792 = vmatmul.mubr.f32.gmra.mrb[22].mxu1 %v1741_v5 }
0x1613   :  { %2798 = vmatprep.mubr.f32.mxu1 %v3381_v56 }
0x1614   :  { %2696 = vmatmul.mubr.f32.gmra.mrb[22].mxu0 %v939_v22 }
0x1615   :  { %2702 = vmatprep.mubr.f32.mxu0 %v3265_v28 }
0x1616   :  { %2799 = vmatmul.mubr.f32.vlgmr.msra.gmra.mrb[16].mxu1 %v3360_v32 }
0x1617   :  { %2801 = vmatprep.mubr.f32.mxu1 %v3363_v37  ;;  %2873 = vmatpush3.bf16.msra.mxu1 %v3326_v58 }
0x1618   :  { %2703 = vmatmul.mubr.f32.vlgmr.msra.gmra.mrb[16].mxu0 %v3275_v18 }
0x1619   :  { %2849 = vmatpush3.bf16.msra.mxu0 %v3244_v9  ;;  %2705 = vmatprep.mubr.f32.mxu0 %v3288_v27 }
0x161a   :  { %2802 = vmatmul.mubr.f32.gmra.mrb[18].mxu1 %v3372_v46 }
0x161b   :  { %2804 = vmatprep.mubr.f32.mxu1 %v3367_v43 }
0x161c   :  { %2706 = vmatmul.mubr.f32.gmra.mrb[18].mxu0 %v3301_v36 }
0x161d   :  { %2708 = vmatprep.mubr.f32.mxu0 %v3402_v38 }
0x161e   :  { %2805 = vmatmul.mubr.f32.gmra.mrb[20].mxu1 %v3390_v61 }
0x161f   :  { %2807 = vmatprep.mubr.f32.mxu1 %v3396_v62 }
0x1620   :  { %2709 = vmatmul.mubr.f32.gmra.mrb[20].mxu0 %v3433_v34 }
0x1621   :  { %2711 = vmatprep.mubr.f32.mxu0 %v3452_v11 }
0x1622   :  { %2808 = vmatmul.mubr.f32.gmra.mrb[22].mxu1 %v3412_v4 }
0x1623   :  { %2814 = vmatprep.mubr.f32.mxu1 %v3381_v56 }
0x1624   :  { %2712 = vmatmul.mubr.f32.gmra.mrb[22].mxu0 %v3470_v33 }
0x1625   :  { %2718 = vmatprep.mubr.f32.mxu0 %v3265_v28 }
0x1626   :  { %2815 = vmatmul.mubr.f32.vlgmr.msra.gmra.mrb[16].mxu1 %v3360_v32 }
0x1627   :  { %2817 = vmatprep.mubr.f32.mxu1 %v3363_v37 }
0x1628   :  { %2719 = vmatmul.mubr.f32.vlgmr.msra.gmra.mrb[16].mxu0 %v3275_v18 }
0x1629   :  { %2721 = vmatprep.mubr.f32.mxu0 %v3288_v27 }
0x162a   :  { %2818 = vmatmul.mubr.f32.gmra.mrb[18].mxu1 %v3372_v46 }
0x162b   :  { %2820 = vmatprep.mubr.f32.mxu1 %v3367_v43 }
0x162c   :  { %2722 = vmatmul.mubr.f32.gmra.mrb[18].mxu0 %v3301_v36 }
0x162d   :  { %2724 = vmatprep.mubr.f32.mxu0 %v3402_v38 }
0x162e   :  { %2821 = vmatmul.mubr.f32.gmra.mrb[20].mxu1 %v3390_v61 }
0x162f   :  { %2823 = vmatprep.mubr.f32.mxu1 %v3396_v62 }
0x1630   :  { %2725 = vmatmul.mubr.f32.gmra.mrb[20].mxu0 %v3433_v34 }
0x1631   :  { %2727 = vmatprep.mubr.f32.mxu0 %v3452_v11 }
0x1632   :  { %2824 = vmatmul.mubr.f32.gmra.mrb[22].mxu1 %v3412_v4 }
0x1634   :  { %2728 = vmatmul.mubr.f32.gmra.mrb[22].mxu0 %v3470_v33 }
0x16f9   :  { %v2816_v9 = vpop.f32.mrb[16].mxu1 }
0x16fa   :  { %2363 = vst [vmem:[%s3648_s6 + $0x8] sm:$0xff] %v2816_v9  ;;  %v2316_v28 = vpop.f32.mrb[17].mxu1 }
0x16fb   :  { %2362 = vst [vmem:[%s3648_s6] sm:$0xff] %v2316_v28  ;;  %v2720_v2 = vpop.f32.mrb[16].mxu0 }
0x16fc   :  { %1561 = vst [vmem:[%s3649_s5 + $0x8] sm:$0xff] %v2720_v2  ;;  %v1514_v17 = vpop.f32.mrb[17].mxu0 }
0x16fd   :  { %1560 = vst [vmem:[%s3649_s5] sm:$0xff] %v1514_v17  ;;  %v2819_v18 = vpop.f32.mrb[18].mxu1 }
0x16fe   :  { %2365 = vst [vmem:[%s3648_s6 + $0x18] sm:$0xff] %v2819_v18  ;;  %v2328_v21 = vpop.f32.mrb[19].mxu1 }
0x16ff   :  { %2364 = vst [vmem:[%s3648_s6 + $0x10] sm:$0xff] %v2328_v21  ;;  %v2723_v26 = vpop.f32.mrb[18].mxu0 }
0x1700   :  { %1563 = vst [vmem:[%s3649_s5 + $0x18] sm:$0xff] %v2723_v26  ;;  %v1526_v27 = vpop.f32.mrb[19].mxu0 }
0x1701   :  { %1562 = vst [vmem:[%s3649_s5 + $0x10] sm:$0xff] %v1526_v27  ;;  %v2822_v31 = vpop.f32.mrb[20].mxu1 }
0x1702   :  { %2367 = vst [vmem:[%s3648_s6 + $0x28] sm:$0xff] %v2822_v31  ;;  %v2340_v35 = vpop.f32.mrb[21].mxu1 }
0x1703   :  { %2366 = vst [vmem:[%s3648_s6 + $0x20] sm:$0xff] %v2340_v35  ;;  %v2726_v36 = vpop.f32.mrb[20].mxu0 }
0x1704   :  { %1565 = vst [vmem:[%s3649_s5 + $0x28] sm:$0xff] %v2726_v36  ;;  %v1538_v40 = vpop.f32.mrb[21].mxu0 }
0x1705   :  { %1564 = vst [vmem:[%s3649_s5 + $0x20] sm:$0xff] %v1538_v40  ;;  %v2825_v42 = vpop.f32.mrb[22].mxu1 }
0x1706   :  { %2369 = vst [vmem:[%s3648_s6 + $0x38] sm:$0xff] %v2825_v42  ;;  %v2352_v58 = vpop.f32.mrb[23].mxu1 }
0x1707   :  { %2368 = vst [vmem:[%s3648_s6 + $0x30] sm:$0xff] %v2352_v58  ;;  %v2729_v14 = vpop.f32.mrb[22].mxu0 }
0x1708   :  { %1567 = vst [vmem:[%s3649_s5 + $0x38] sm:$0xff] %v2729_v14  ;;  %v1550_v48 = vpop.f32.mrb[23].mxu0 }
0x1709   :  { %1566 = vst [vmem:[%s3649_s5 + $0x30] sm:$0xff] %v1550_v48 }

</bundles_post_ra>
